<compile_context>
chip_gen: v7x
topology: tpu7x:2x2x1
jax: 0.10.0
libtpu: 0.0.40
codegen_flags: <defaults>
</compile_context>

<pallas_src>
import functools

import jax
import jax.numpy as jnp
from jax.experimental import pallas as pl
from jax.experimental.pallas import tpu as pltpu

_BN_EPS = 1e-5


def _bn_train(x, gamma, beta):
    """BatchNorm1d, training mode: per-feature batch stats, biased variance."""
    mu = jnp.mean(x, axis=0, keepdims=True)
    var = jnp.mean((x - mu) ** 2, axis=0, keepdims=True)
    return (x - mu) * jax.lax.rsqrt(var + _BN_EPS) * gamma + beta


# ---------------------------------------------------------------------------
# Fused kernel, K-tiled over the reduce-linear contraction dims.
#   grid = (nk,)   ("arbitrary")
#   per step: acc1 += x1[:, k-chunk] @ w1_tile ; acc2 += x2[:, k-chunk] @ w2_tile
#   k == last: bias -> [Linear,BN,Tanh]x3 -> softmax -> scale x1/x2 -> store.
# ---------------------------------------------------------------------------
def _attn_kernel(x1f_ref, x2f_ref,
                 w1_ref, b1_ref, w2_ref, b2_ref,
                 wa1_ref, wa2_ref, ba_ref, ga_ref, bta_ref,
                 wb_ref, bb_ref, gb_ref, btb_ref,
                 wc_ref, bc_ref, gc_ref, btc_ref,
                 out1_ref, out2_ref, score_ref,
                 acc1_ref, acc2_ref,
                 *, tk1, tk2):
    k = pl.program_id(0)
    nk = pl.num_programs(0)

    @pl.when(k == 0)
    def _():
        acc1_ref[...] = jnp.zeros_like(acc1_ref)
        acc2_ref[...] = jnp.zeros_like(acc2_ref)

    wdt = w1_ref.dtype                       # f32 or bf16 (big weights only)

    # K-chunk of the resident flattened activations matching this weight tile.
    o1 = pl.multiple_of(k * tk1, tk1)
    o2 = pl.multiple_of(k * tk2, tk2)
    x1c = x1f_ref[:, pl.ds(o1, tk1)]         # (B, tk1) f32
    x2c = x2f_ref[:, pl.ds(o2, tk2)]         # (B, tk2) f32

    # reduce_d1 / reduce_d2 partial products (f32 accumulation on the MXU).
    acc1_ref[...] += jnp.dot(x1c.astype(wdt), w1_ref[...],
                             preferred_element_type=jnp.float32)
    acc2_ref[...] += jnp.dot(x2c.astype(wdt), w2_ref[...],
                             preferred_element_type=jnp.float32)

    # Epilogue: everything non-linear happens only after full accumulation.
    @pl.when(k == nk - 1)
    def _():
        new1 = acc1_ref[...] + b1_ref[...]           # (B, H)
        new2 = acc2_ref[...] + b2_ref[...]           # (B, H)

        # concat([new1, new2], 1) @ wa == new1 @ wa[:H] + new2 @ wa[H:]
        wa1 = wa1_ref[...]
        wa2 = wa2_ref[...]
        h = (jnp.dot(new1.astype(wa1.dtype), wa1,
                     preferred_element_type=jnp.float32)
             + jnp.dot(new2.astype(wa2.dtype), wa2,
                       preferred_element_type=jnp.float32)
             + ba_ref[...])
        h = jnp.tanh(_bn_train(h, ga_ref[...], bta_ref[...]))
        h = jnp.dot(h, wb_ref[...], preferred_element_type=jnp.float32) + bb_ref[...]
        h = jnp.tanh(_bn_train(h, gb_ref[...], btb_ref[...]))
        h = jnp.dot(h, wc_ref[...], preferred_element_type=jnp.float32) + bc_ref[...]
        h = jnp.tanh(_bn_train(h, gc_ref[...], btc_ref[...]))

        # softmax over the 2 modality logits (dim=1)
        m = jnp.max(h, axis=1, keepdims=True)
        e = jnp.exp(h - m)
        score = e / jnp.sum(e, axis=1, keepdims=True)     # (B, 2) f32
        score_ref[...] = score

        # Per-sample scaling; two fully lane-dense flat stores (re-read the
        # activations from their refs — no long-lived values from earlier).
        out1_ref[...] = x1f_ref[...] * score[:, 0:1]      # (B, T*D1)
        out2_ref[...] = x2f_ref[...] * score[:, 1:2]      # (B, T*D2)


def _whole(a):
    """Whole-array block, constant index map => DMA'd once, stays resident."""
    nd = a.ndim
    return pl.BlockSpec(a.shape, lambda k, _nd=nd: (0,) * _nd)


def _pick_num_k_tiles(flat1, flat2, max_rows):
    """Smallest nk such that both K tiles divide evenly, are sublane (8)
    aligned, and have <= max_rows rows.  Falls back to 1 (whole K)."""
    for nk in range(1, min(flat1, flat2) // 8 + 1):
        if flat1 % nk or flat2 % nk:
            continue
        tk1, tk2 = flat1 // nk, flat2 // nk
        if tk1 % 8 or tk2 % 8:
            continue
        if tk1 <= max_rows and tk2 <= max_rows:
            return nk
    return 1


def attn_forward(x1, x2, params, *, max_k_rows=256):
    """params must come from `prepare_params` (wa pre-split, weights pre-cast).

    max_k_rows: K-tile row budget.  At full scale (flat1=7552, flat2=2688,
    H=1280) use ~1024 rows (fits the 32 MiB default scoped VMEM / v7x 64 MiB
    with double-buffering and >= 85% of HBM roofline per the tile sweep)."""
    B, T, D1 = x1.shape
    D2 = x2.shape[2]
    flat1, flat2 = T * D1, T * D2

    # torch .view(B, -1): row-major metadata reshape, no data movement.
    x1f = x1.reshape(B, flat1)
    x2f = x2.reshape(B, flat2)

    w1, w2 = params["w1"], params["w2"]
    wa1, wa2 = params["wa1"], params["wa2"]
    H = w1.shape[1]
    M1 = wa1.shape[1]
    M2 = params["wb"].shape[1]

    nk = _pick_num_k_tiles(flat1, flat2, max_k_rows)
    tk1, tk2 = flat1 // nk, flat2 // nk

    inputs = (x1f, x2f,
              w1, params["b1"], w2, params["b2"],
              wa1, wa2, params["ba"], params["ga"], params["bta"],
              params["wb"], params["bb"], params["gb"], params["btb"],
              params["wc"], params["bc"], params["gc"], params["btc"])

    in_specs = [
        _whole(x1f), _whole(x2f),
        pl.BlockSpec((tk1, H), lambda k: (k, 0)), _whole(params["b1"]),
        pl.BlockSpec((tk2, H), lambda k: (k, 0)), _whole(params["b2"]),
        _whole(wa1), _whole(wa2), _whole(params["ba"]),
        _whole(params["ga"]), _whole(params["bta"]),
        _whole(params["wb"]), _whole(params["bb"]),
        _whole(params["gb"]), _whole(params["btb"]),
        _whole(params["wc"]), _whole(params["bc"]),
        _whole(params["gc"]), _whole(params["btc"]),
    ]
    out_specs = (
        pl.BlockSpec((B, flat1), lambda k: (0, 0)),
        pl.BlockSpec((B, flat2), lambda k: (0, 0)),
        pl.BlockSpec((B, 2), lambda k: (0, 0)),
    )
    out_shape = (
        jax.ShapeDtypeStruct((B, flat1), jnp.float32),
        jax.ShapeDtypeStruct((B, flat2), jnp.float32),
        jax.ShapeDtypeStruct((B, 2), jnp.float32),
    )

    flops = (2 * B * (flat1 * H + flat2 * H + 2 * H * M1 + M1 * M2 + M2 * 2)
             + B * (flat1 + flat2))
    transcendentals = B * (M1 + M2 + 2 + 2)               # tanh + exp
    bytes_accessed = (sum(int(a.size) * a.dtype.itemsize for a in inputs)
                      + B * (flat1 + flat2 + 2) * 4)

    kernel = functools.partial(_attn_kernel, tk1=tk1, tk2=tk2)

    out1_flat, out2_flat, score = pl.pallas_call(
        kernel,
        out_shape=out_shape,
        grid_spec=pltpu.PrefetchScalarGridSpec(
            num_scalar_prefetch=0,
            grid=(nk,),
            in_specs=in_specs,
            out_specs=out_specs,
            scratch_shapes=[pltpu.VMEM((B, H), jnp.float32),
                            pltpu.VMEM((B, H), jnp.float32)]),
        compiler_params=pltpu.CompilerParams(
            dimension_semantics=("arbitrary",)),
        cost_estimate=pl.CostEstimate(flops=flops,
                                      transcendentals=transcendentals,
                                      bytes_accessed=bytes_accessed),
    )(*inputs)

    # Wrapper-side interleave: metadata-only reshapes + one tiny concat
    # (output bytes are negligible vs. the weight stream).
    fused = jnp.concatenate(
        [out1_flat.reshape(B, T, D1), out2_flat.reshape(B, T, D2)], axis=2)
    return fused, score[:, 0], score[:, 1]


# ---------------------------------------------------------------------------
# One-time parameter preparation (hoisted OUT of the forward path):
#   * split wa into its two H-row halves,
#   * cast the big streamed weights (w1, w2, wa halves) to the streaming dtype.
# ---------------------------------------------------------------------------
def prepare_params(params, big_weight_dtype=jnp.float32):
    H = params["w1"].shape[1]
    p = {k: v for k, v in params.items() if k != "wa"}
    p["w1"] = params["w1"].astype(big_weight_dtype)
    p["w2"] = params["w2"].astype(big_weight_dtype)
    p["wa1"] = params["wa"][:H, :].astype(big_weight_dtype)
    p["wa2"] = params["wa"][H:, :].astype(big_weight_dtype)
    return p


# ---------------------------------------------------------------------------
# Pure-JAX reference (mirrors the PyTorch forward; optional matched bf16 casts
# at the same points as the kernel for the bf16 check).
# ---------------------------------------------------------------------------
def attn_reference(x1, x2, params, *, big_weight_dtype=jnp.float32):
    B = x1.shape[0]
    dt = big_weight_dtype
    w1 = params["w1"].astype(dt)
    w2 = params["w2"].astype(dt)
    wa = params["wa"].astype(dt)
    new1 = jnp.dot(x1.reshape(B, -1).astype(dt), w1,
                   preferred_element_type=jnp.float32) + params["b1"]
    new2 = jnp.dot(x2.reshape(B, -1).astype(dt), w2,
                   preferred_element_type=jnp.float32) + params["b2"]
    cat = jnp.concatenate([new1, new2], axis=1)
    h = jnp.dot(cat.astype(dt), wa,
                preferred_element_type=jnp.float32) + params["ba"]
    h = jnp.tanh(_bn_train(h, params["ga"], params["bta"]))
    h = jnp.tanh(_bn_train(h @ params["wb"] + params["bb"],
                           params["gb"], params["btb"]))
    h = jnp.tanh(_bn_train(h @ params["wc"] + params["bc"],
                           params["gc"], params["btc"]))
    score = jax.nn.softmax(h, axis=1)
    f1 = x1 * score[:, 0].reshape(-1, 1, 1)
    f2 = x2 * score[:, 1].reshape(-1, 1, 1)
    return jnp.concatenate([f1, f2], axis=2), score[:, 0], score[:, 1]


# ---------------------------------------------------------------------------
# Deterministic synthetic parameters (structure of the original __init__, scaled)
# ---------------------------------------------------------------------------
def init_params(key, flat1, flat2, H=128, M1=128, M2=32):
    ks = jax.random.split(key, 12)

    def lin(kw, kb, fan_in, fan_out):
        w = jax.random.normal(kw, (fan_in, fan_out), jnp.float32) / jnp.sqrt(fan_in)
        b = 0.05 * jax.random.normal(kb, (1, fan_out), jnp.float32)
        return w, b

    def bn(k, n):
        g = 1.0 + 0.1 * jax.random.normal(k, (1, n), jnp.float32)
        bt = 0.1 * jax.random.normal(jax.random.fold_in(k, 1), (1, n), jnp.float32)
        return g, bt

    p = {}
    p["w1"], p["b1"] = lin(ks[0], ks[1], flat1, H)          # reduce_d1
    p["w2"], p["b2"] = lin(ks[2], ks[3], flat2, H)          # reduce_d2
    p["wa"], p["ba"] = lin(ks[4], ks[5], 2 * H, M1)         # weight[0]
    p["ga"], p["bta"] = bn(ks[6], M1)                       # weight[1]
    p["wb"], p["bb"] = lin(ks[7], ks[8], M1, M2)            # weight[3]
    p["gb"], p["btb"] = bn(ks[9], M2)                       # weight[4]
    p["wc"], p["bc"] = lin(ks[10], ks[11], M2, 2)           # weight[6]
    p["gc"], p["btc"] = bn(jax.random.fold_in(key, 99), 2)  # weight[7]
    return p


if __name__ == "__main__":
    B, T, D1, D2 = 8, 8, 128, 64   # small shapes consistent with (B, T, Di) inputs
    key = jax.random.PRNGKey(0)
    k1, k2, kp = jax.random.split(key, 3)
    hidden_state_1 = jax.random.normal(k1, (B, T, D1), jnp.float32)
    hidden_state_2 = jax.random.normal(k2, (B, T, D2), jnp.float32)
    params = init_params(kp, T * D1, T * D2)

    # 1) f32 weights: strict check against the PyTorch-faithful reference.
    #    max_k_rows=256 -> 4 K tiles here, exercising init/accumulate/epilogue.
    p32 = prepare_params(params, jnp.float32)
    fused, s0, s1 = attn_forward(hidden_state_1, hidden_state_2, p32,
                                 max_k_rows=256)
    jax.block_until_ready((fused, s0, s1))
    rf, r0, r1 = attn_reference(hidden_state_1, hidden_state_2, params)
    assert fused.shape == (B, T, D1 + D2) and s0.shape == (B,) and s1.shape == (B,)
    assert jnp.allclose(fused, rf, rtol=2e-3, atol=2e-3)
    assert jnp.allclose(s0, r0, rtol=2e-3, atol=2e-3)
    assert jnp.allclose(s1, r1, rtol=2e-3, atol=2e-3)

    # 2) bf16 weight-streaming path: weights pre-converted ONCE (no per-call
    #    cast / HBM round trip); checked against a precision-matched reference
    #    (same cast points, f32 accumulation).
    pbf = prepare_params(params, jnp.bfloat16)
    fused_b, s0_b, s1_b = attn_forward(hidden_state_1, hidden_state_2, pbf,
                                       max_k_rows=256)
    jax.block_until_ready((fused_b, s0_b, s1_b))
    rfb, r0b, r1b = attn_reference(hidden_state_1, hidden_state_2, params,
                                   big_weight_dtype=jnp.bfloat16)
    assert jnp.allclose(fused_b, rfb, rtol=5e-3, atol=5e-3)
    assert jnp.allclose(s0_b, r0b, rtol=5e-3, atol=5e-3)
    assert jnp.allclose(s1_b, r1b, rtol=5e-3, atol=5e-3)

    print("KERNEL_OK")
</pallas_src>

<mosaic_0001>
module attributes {stable_mosaic.version = 11 : i64} {
  func.func @_attn_kernel(%arg0: i32, %arg1: memref<8x1024xf32, #tpu.memory_space<vmem>>, %arg2: memref<8x512xf32, #tpu.memory_space<vmem>>, %arg3: memref<256x128xf32, #tpu.memory_space<vmem>>, %arg4: memref<1x128xf32, #tpu.memory_space<vmem>>, %arg5: memref<128x128xf32, #tpu.memory_space<vmem>>, %arg6: memref<1x128xf32, #tpu.memory_space<vmem>>, %arg7: memref<128x128xf32, #tpu.memory_space<vmem>>, %arg8: memref<128x128xf32, #tpu.memory_space<vmem>>, %arg9: memref<1x128xf32, #tpu.memory_space<vmem>>, %arg10: memref<1x128xf32, #tpu.memory_space<vmem>>, %arg11: memref<1x128xf32, #tpu.memory_space<vmem>>, %arg12: memref<128x32xf32, #tpu.memory_space<vmem>>, %arg13: memref<1x32xf32, #tpu.memory_space<vmem>>, %arg14: memref<1x32xf32, #tpu.memory_space<vmem>>, %arg15: memref<1x32xf32, #tpu.memory_space<vmem>>, %arg16: memref<32x2xf32, #tpu.memory_space<vmem>>, %arg17: memref<1x2xf32, #tpu.memory_space<vmem>>, %arg18: memref<1x2xf32, #tpu.memory_space<vmem>>, %arg19: memref<1x2xf32, #tpu.memory_space<vmem>>, %arg20: memref<8x1024xf32, #tpu.memory_space<vmem>>, %arg21: memref<8x512xf32, #tpu.memory_space<vmem>>, %arg22: memref<8x2xf32, #tpu.memory_space<vmem>>, %arg23: memref<8x128xf32, #tpu.memory_space<vmem>>, %arg24: memref<8x128xf32, #tpu.memory_space<vmem>>) attributes {dimension_semantics = [#tpu.dimension_semantics<arbitrary>], iteration_bounds = array<i64: 4>, scalar_prefetch = 0 : i64, scratch_operands = 2 : i64, tpu.core_type = #tpu.core_type<tc>, window_params = [{pipeline_mode = #tpu.pipeline_mode<synchronous>, transform_indices = @transform_0, window_bounds = array<i64: 8, 1024>}, {pipeline_mode = #tpu.pipeline_mode<synchronous>, transform_indices = @transform_1, window_bounds = array<i64: 8, 512>}, {transform_indices = @transform_2, window_bounds = array<i64: 256, 128>}, {pipeline_mode = #tpu.pipeline_mode<synchronous>, transform_indices = @transform_3, window_bounds = array<i64: 1, 128>}, {transform_indices = @transform_4, window_bounds = array<i64: 128, 128>}, {pipeline_mode = #tpu.pipeline_mode<synchronous>, transform_indices = @transform_5, window_bounds = array<i64: 1, 128>}, {pipeline_mode = #tpu.pipeline_mode<synchronous>, transform_indices = @transform_6, window_bounds = array<i64: 128, 128>}, {pipeline_mode = #tpu.pipeline_mode<synchronous>, transform_indices = @transform_7, window_bounds = array<i64: 128, 128>}, {pipeline_mode = #tpu.pipeline_mode<synchronous>, transform_indices = @transform_8, window_bounds = array<i64: 1, 128>}, {pipeline_mode = #tpu.pipeline_mode<synchronous>, transform_indices = @transform_9, window_bounds = array<i64: 1, 128>}, {pipeline_mode = #tpu.pipeline_mode<synchronous>, transform_indices = @transform_10, window_bounds = array<i64: 1, 128>}, {pipeline_mode = #tpu.pipeline_mode<synchronous>, transform_indices = @transform_11, window_bounds = array<i64: 128, 32>}, {pipeline_mode = #tpu.pipeline_mode<synchronous>, transform_indices = @transform_12, window_bounds = array<i64: 1, 32>}, {pipeline_mode = #tpu.pipeline_mode<synchronous>, transform_indices = @transform_13, window_bounds = array<i64: 1, 32>}, {pipeline_mode = #tpu.pipeline_mode<synchronous>, transform_indices = @transform_14, window_bounds = array<i64: 1, 32>}, {pipeline_mode = #tpu.pipeline_mode<synchronous>, transform_indices = @transform_15, window_bounds = array<i64: 32, 2>}, {pipeline_mode = #tpu.pipeline_mode<synchronous>, transform_indices = @transform_16, window_bounds = array<i64: 1, 2>}, {pipeline_mode = #tpu.pipeline_mode<synchronous>, transform_indices = @transform_17, window_bounds = array<i64: 1, 2>}, {pipeline_mode = #tpu.pipeline_mode<synchronous>, transform_indices = @transform_18, window_bounds = array<i64: 1, 2>}, {pipeline_mode = #tpu.pipeline_mode<synchronous>, transform_indices = @transform_19, window_bounds = array<i64: 8, 1024>}, {pipeline_mode = #tpu.pipeline_mode<synchronous>, transform_indices = @transform_20, window_bounds = array<i64: 8, 512>}, {pipeline_mode = #tpu.pipeline_mode<synchronous>, transform_indices = @transform_21, window_bounds = array<i64: 8, 2>}]} {
    %c0_i32 = arith.constant 0 : i32
    %0 = arith.cmpi eq, %arg0, %c0_i32 : i32
    %1 = arith.extui %0 : i1 to i32
    %c0_i32_0 = arith.constant 0 : i32
    %2 = arith.cmpi ne, %1, %c0_i32_0 : i32
    scf.if %2 {
      %cst_16 = arith.constant 0.000000e+00 : f32
      %24 = vector.broadcast %cst_16 : f32 to vector<8x128xf32>
      %c0_17 = arith.constant 0 : index
      %c0_18 = arith.constant 0 : index
      %25 = vector.load %arg23[%c0_17, %c0_18] : memref<8x128xf32, #tpu.memory_space<vmem>>, vector<8x128xf32>
      tpu.vector_store %arg23[%c0_17, %c0_18], %24 {strides = array<i32>} : memref<8x128xf32, #tpu.memory_space<vmem>>, vector<8x128xf32>,
      %cst_19 = arith.constant 0.000000e+00 : f32
      %26 = vector.broadcast %cst_19 : f32 to vector<8x128xf32>
      %c0_20 = arith.constant 0 : index
      %c0_21 = arith.constant 0 : index
      %27 = vector.load %arg24[%c0_20, %c0_21] : memref<8x128xf32, #tpu.memory_space<vmem>>, vector<8x128xf32>
      tpu.vector_store %arg24[%c0_20, %c0_21], %26 {strides = array<i32>} : memref<8x128xf32, #tpu.memory_space<vmem>>, vector<8x128xf32>,
    } else {
    }
    %c256_i32 = arith.constant 256 : i32
    %3 = arith.muli %arg0, %c256_i32 : i32
    %4 = tpu.assume_multiple %3, 256 : i32
    %c128_i32 = arith.constant 128 : i32
    %5 = arith.muli %arg0, %c128_i32 : i32
    %6 = tpu.assume_multiple %5, 128 : i32
    %c0 = arith.constant 0 : index
    %7 = arith.index_cast %4 : i32 to index
    %8 = vector.load %arg1[%c0, %7] : memref<8x1024xf32, #tpu.memory_space<vmem>>, vector<8x256xf32>
    %c0_1 = arith.constant 0 : index
    %9 = arith.index_cast %6 : i32 to index
    %10 = vector.load %arg2[%c0_1, %9] : memref<8x512xf32, #tpu.memory_space<vmem>>, vector<8x128xf32>
    %c0_2 = arith.constant 0 : index
    %c0_3 = arith.constant 0 : index
    %11 = vector.load %arg23[%c0_2, %c0_3] : memref<8x128xf32, #tpu.memory_space<vmem>>, vector<8x128xf32>
    %c0_4 = arith.constant 0 : index
    %c0_5 = arith.constant 0 : index
    %12 = vector.load %arg3[%c0_4, %c0_5] : memref<256x128xf32, #tpu.memory_space<vmem>>, vector<256x128xf32>
    %cst = arith.constant dense<0.000000e+00> : vector<8x128xf32>
    %13 = tpu.matmul %8, %12, %cst {dimension_numbers = #tpu.dot_dimension_numbers<[1], [0], [0], [1], [0, 0, 1, 1], [], []>} : vector<8x256xf32>, vector<256x128xf32>, vector<8x128xf32> -> vector<8x128xf32>
    %14 = arith.addf %11, %13 : vector<8x128xf32>
    %c0_6 = arith.constant 0 : index
    %c0_7 = arith.constant 0 : index
    %15 = vector.load %arg23[%c0_6, %c0_7] : memref<8x128xf32, #tpu.memory_space<vmem>>, vector<8x128xf32>
    tpu.vector_store %arg23[%c0_6, %c0_7], %14 {strides = array<i32>} : memref<8x128xf32, #tpu.memory_space<vmem>>, vector<8x128xf32>,
    %c0_8 = arith.constant 0 : index
    %c0_9 = arith.constant 0 : index
    %16 = vector.load %arg24[%c0_8, %c0_9] : memref<8x128xf32, #tpu.memory_space<vmem>>, vector<8x128xf32>
    %c0_10 = arith.constant 0 : index
    %c0_11 = arith.constant 0 : index
    %17 = vector.load %arg5[%c0_10, %c0_11] : memref<128x128xf32, #tpu.memory_space<vmem>>, vector<128x128xf32>
    %cst_12 = arith.constant dense<0.000000e+00> : vector<8x128xf32>
    %18 = tpu.matmul %10, %17, %cst_12 {dimension_numbers = #tpu.dot_dimension_numbers<[1], [0], [0], [1], [0, 0, 1, 1], [], []>} : vector<8x128xf32>, vector<128x128xf32>, vector<8x128xf32> -> vector<8x128xf32>
    %19 = arith.addf %16, %18 : vector<8x128xf32>
    %c0_13 = arith.constant 0 : index
    %c0_14 = arith.constant 0 : index
    %20 = vector.load %arg24[%c0_13, %c0_14] : memref<8x128xf32, #tpu.memory_space<vmem>>, vector<8x128xf32>
    tpu.vector_store %arg24[%c0_13, %c0_14], %19 {strides = array<i32>} : memref<8x128xf32, #tpu.memory_space<vmem>>, vector<8x128xf32>,
    %c3_i32 = arith.constant 3 : i32
    %21 = arith.cmpi eq, %arg0, %c3_i32 : i32
    %22 = arith.extui %21 : i1 to i32
    %c0_i32_15 = arith.constant 0 : i32
    %23 = arith.cmpi ne, %22, %c0_i32_15 : i32
    scf.if %23 {
      %c0_16 = arith.constant 0 : index
      %c0_17 = arith.constant 0 : index
      %24 = vector.load %arg23[%c0_16, %c0_17] : memref<8x128xf32, #tpu.memory_space<vmem>>, vector<8x128xf32>
      %c0_18 = arith.constant 0 : index
      %c0_19 = arith.constant 0 : index
      %25 = vector.load %arg4[%c0_18, %c0_19] : memref<1x128xf32, #tpu.memory_space<vmem>>, vector<1x128xf32>
      %26 = vector.broadcast %25 : vector<1x128xf32> to vector<8x128xf32>
      %27 = arith.addf %24, %26 : vector<8x128xf32>
      %c0_20 = arith.constant 0 : index
      %c0_21 = arith.constant 0 : index
      %28 = vector.load %arg24[%c0_20, %c0_21] : memref<8x128xf32, #tpu.memory_space<vmem>>, vector<8x128xf32>
      %c0_22 = arith.constant 0 : index
      %c0_23 = arith.constant 0 : index
      %29 = vector.load %arg6[%c0_22, %c0_23] : memref<1x128xf32, #tpu.memory_space<vmem>>, vector<1x128xf32>
      %30 = vector.broadcast %29 : vector<1x128xf32> to vector<8x128xf32>
      %31 = arith.addf %28, %30 : vector<8x128xf32>
      %c0_24 = arith.constant 0 : index
      %c0_25 = arith.constant 0 : index
      %32 = vector.load %arg7[%c0_24, %c0_25] : memref<128x128xf32, #tpu.memory_space<vmem>>, vector<128x128xf32>
      %c0_26 = arith.constant 0 : index
      %c0_27 = arith.constant 0 : index
      %33 = vector.load %arg8[%c0_26, %c0_27] : memref<128x128xf32, #tpu.memory_space<vmem>>, vector<128x128xf32>
      %cst_28 = arith.constant dense<0.000000e+00> : vector<8x128xf32>
      %34 = tpu.matmul %27, %32, %cst_28 {dimension_numbers = #tpu.dot_dimension_numbers<[1], [0], [0], [1], [0, 0, 1, 1], [], []>} : vector<8x128xf32>, vector<128x128xf32>, vector<8x128xf32> -> vector<8x128xf32>
      %cst_29 = arith.constant dense<0.000000e+00> : vector<8x128xf32>
      %35 = tpu.matmul %31, %33, %cst_29 {dimension_numbers = #tpu.dot_dimension_numbers<[1], [0], [0], [1], [0, 0, 1, 1], [], []>} : vector<8x128xf32>, vector<128x128xf32>, vector<8x128xf32> -> vector<8x128xf32>
      %36 = arith.addf %34, %35 : vector<8x128xf32>
      %c0_30 = arith.constant 0 : index
      %c0_31 = arith.constant 0 : index
      %37 = vector.load %arg9[%c0_30, %c0_31] : memref<1x128xf32, #tpu.memory_space<vmem>>, vector<1x128xf32>
      %38 = vector.broadcast %37 : vector<1x128xf32> to vector<8x128xf32>
      %39 = arith.addf %36, %38 : vector<8x128xf32>
      %c0_32 = arith.constant 0 : index
      %c0_33 = arith.constant 0 : index
      %40 = vector.load %arg10[%c0_32, %c0_33] : memref<1x128xf32, #tpu.memory_space<vmem>>, vector<1x128xf32>
      %c0_34 = arith.constant 0 : index
      %c0_35 = arith.constant 0 : index
      %41 = vector.load %arg11[%c0_34, %c0_35] : memref<1x128xf32, #tpu.memory_space<vmem>>, vector<1x128xf32>
      %cst_36 = arith.constant dense<0.000000e+00> : vector<128xf32>
      %42 = vector.multi_reduction <add>, %39, %cst_36 [0] : vector<8x128xf32> to vector<128xf32>
      %43 = vector.shape_cast %42 : vector<128xf32> to vector<1x128xf32>
      %cst_37 = arith.constant 8.000000e+00 : f32
      %44 = vector.broadcast %cst_37 : f32 to vector<1x128xf32>
      %45 = arith.divf %43, %44 : vector<1x128xf32>
      %46 = vector.broadcast %45 : vector<1x128xf32> to vector<8x128xf32>
      %47 = arith.subf %39, %46 : vector<8x128xf32>
      %48 = arith.mulf %47, %47 : vector<8x128xf32>
      %cst_38 = arith.constant dense<0.000000e+00> : vector<128xf32>
      %49 = vector.multi_reduction <add>, %48, %cst_38 [0] : vector<8x128xf32> to vector<128xf32>
      %50 = vector.shape_cast %49 : vector<128xf32> to vector<1x128xf32>
      %cst_39 = arith.constant 8.000000e+00 : f32
      %51 = vector.broadcast %cst_39 : f32 to vector<1x128xf32>
      %52 = arith.divf %50, %51 : vector<1x128xf32>
      %53 = vector.broadcast %45 : vector<1x128xf32> to vector<8x128xf32>
      %54 = arith.subf %39, %53 : vector<8x128xf32>
      %cst_40 = arith.constant 9.99999974E-6 : f32
      %55 = vector.broadcast %cst_40 : f32 to vector<1x128xf32>
      %56 = arith.addf %52, %55 : vector<1x128xf32>
      %57 = math.rsqrt %56 : vector<1x128xf32>
      %58 = vector.broadcast %57 : vector<1x128xf32> to vector<8x128xf32>
      %59 = arith.mulf %54, %58 : vector<8x128xf32>
      %60 = vector.broadcast %40 : vector<1x128xf32> to vector<8x128xf32>
      %61 = arith.mulf %59, %60 : vector<8x128xf32>
      %62 = vector.broadcast %41 : vector<1x128xf32> to vector<8x128xf32>
      %63 = arith.addf %61, %62 : vector<8x128xf32>
      %64 = math.tanh %63 : vector<8x128xf32>
      %c0_41 = arith.constant 0 : index
      %c0_42 = arith.constant 0 : index
      %65 = vector.load %arg12[%c0_41, %c0_42] : memref<128x32xf32, #tpu.memory_space<vmem>>, vector<128x32xf32>
      %cst_43 = arith.constant dense<0.000000e+00> : vector<8x32xf32>
      %66 = tpu.matmul %64, %65, %cst_43 {dimension_numbers = #tpu.dot_dimension_numbers<[1], [0], [0], [1], [0, 0, 1, 1], [], []>} : vector<8x128xf32>, vector<128x32xf32>, vector<8x32xf32> -> vector<8x32xf32>
      %c0_44 = arith.constant 0 : index
      %c0_45 = arith.constant 0 : index
      %67 = vector.load %arg13[%c0_44, %c0_45] : memref<1x32xf32, #tpu.memory_space<vmem>>, vector<1x32xf32>
      %68 = vector.broadcast %67 : vector<1x32xf32> to vector<8x32xf32>
      %69 = arith.addf %66, %68 : vector<8x32xf32>
      %c0_46 = arith.constant 0 : index
      %c0_47 = arith.constant 0 : index
      %70 = vector.load %arg14[%c0_46, %c0_47] : memref<1x32xf32, #tpu.memory_space<vmem>>, vector<1x32xf32>
      %c0_48 = arith.constant 0 : index
      %c0_49 = arith.constant 0 : index
      %71 = vector.load %arg15[%c0_48, %c0_49] : memref<1x32xf32, #tpu.memory_space<vmem>>, vector<1x32xf32>
      %cst_50 = arith.constant dense<0.000000e+00> : vector<32xf32>
      %72 = vector.multi_reduction <add>, %69, %cst_50 [0] : vector<8x32xf32> to vector<32xf32>
      %73 = vector.shape_cast %72 : vector<32xf32> to vector<1x32xf32>
      %cst_51 = arith.constant 8.000000e+00 : f32
      %74 = vector.broadcast %cst_51 : f32 to vector<1x32xf32>
      %75 = arith.divf %73, %74 : vector<1x32xf32>
      %76 = vector.broadcast %75 : vector<1x32xf32> to vector<8x32xf32>
      %77 = arith.subf %69, %76 : vector<8x32xf32>
      %78 = arith.mulf %77, %77 : vector<8x32xf32>
      %cst_52 = arith.constant dense<0.000000e+00> : vector<32xf32>
      %79 = vector.multi_reduction <add>, %78, %cst_52 [0] : vector<8x32xf32> to vector<32xf32>
      %80 = vector.shape_cast %79 : vector<32xf32> to vector<1x32xf32>
      %cst_53 = arith.constant 8.000000e+00 : f32
      %81 = vector.broadcast %cst_53 : f32 to vector<1x32xf32>
      %82 = arith.divf %80, %81 : vector<1x32xf32>
      %83 = vector.broadcast %75 : vector<1x32xf32> to vector<8x32xf32>
      %84 = arith.subf %69, %83 : vector<8x32xf32>
      %cst_54 = arith.constant 9.99999974E-6 : f32
      %85 = vector.broadcast %cst_54 : f32 to vector<1x32xf32>
      %86 = arith.addf %82, %85 : vector<1x32xf32>
      %87 = math.rsqrt %86 : vector<1x32xf32>
      %88 = vector.broadcast %87 : vector<1x32xf32> to vector<8x32xf32>
      %89 = arith.mulf %84, %88 : vector<8x32xf32>
      %90 = vector.broadcast %70 : vector<1x32xf32> to vector<8x32xf32>
      %91 = arith.mulf %89, %90 : vector<8x32xf32>
      %92 = vector.broadcast %71 : vector<1x32xf32> to vector<8x32xf32>
      %93 = arith.addf %91, %92 : vector<8x32xf32>
      %94 = math.tanh %93 : vector<8x32xf32>
      %c0_55 = arith.constant 0 : index
      %c0_56 = arith.constant 0 : index
      %95 = vector.load %arg16[%c0_55, %c0_56] : memref<32x2xf32, #tpu.memory_space<vmem>>, vector<32x2xf32>
      %cst_57 = arith.constant dense<0.000000e+00> : vector<8x2xf32>
      %96 = tpu.matmul %94, %95, %cst_57 {dimension_numbers = #tpu.dot_dimension_numbers<[1], [0], [0], [1], [0, 0, 1, 1], [], []>} : vector<8x32xf32>, vector<32x2xf32>, vector<8x2xf32> -> vector<8x2xf32>
      %c0_58 = arith.constant 0 : index
      %c0_59 = arith.constant 0 : index
      %97 = vector.load %arg17[%c0_58, %c0_59] : memref<1x2xf32, #tpu.memory_space<vmem>>, vector<1x2xf32>
      %98 = vector.broadcast %97 : vector<1x2xf32> to vector<8x2xf32>
      %99 = arith.addf %96, %98 : vector<8x2xf32>
      %c0_60 = arith.constant 0 : index
      %c0_61 = arith.constant 0 : index
      %100 = vector.load %arg18[%c0_60, %c0_61] : memref<1x2xf32, #tpu.memory_space<vmem>>, vector<1x2xf32>
      %c0_62 = arith.constant 0 : index
      %c0_63 = arith.constant 0 : index
      %101 = vector.load %arg19[%c0_62, %c0_63] : memref<1x2xf32, #tpu.memory_space<vmem>>, vector<1x2xf32>
      %cst_64 = arith.constant dense<0.000000e+00> : vector<2xf32>
      %102 = vector.multi_reduction <add>, %99, %cst_64 [0] : vector<8x2xf32> to vector<2xf32>
      %103 = vector.shape_cast %102 : vector<2xf32> to vector<1x2xf32>
      %cst_65 = arith.constant 8.000000e+00 : f32
      %104 = vector.broadcast %cst_65 : f32 to vector<1x2xf32>
      %105 = arith.divf %103, %104 : vector<1x2xf32>
      %106 = vector.broadcast %105 : vector<1x2xf32> to vector<8x2xf32>
      %107 = arith.subf %99, %106 : vector<8x2xf32>
      %108 = arith.mulf %107, %107 : vector<8x2xf32>
      %cst_66 = arith.constant dense<0.000000e+00> : vector<2xf32>
      %109 = vector.multi_reduction <add>, %108, %cst_66 [0] : vector<8x2xf32> to vector<2xf32>
      %110 = vector.shape_cast %109 : vector<2xf32> to vector<1x2xf32>
      %cst_67 = arith.constant 8.000000e+00 : f32
      %111 = vector.broadcast %cst_67 : f32 to vector<1x2xf32>
      %112 = arith.divf %110, %111 : vector<1x2xf32>
      %113 = vector.broadcast %105 : vector<1x2xf32> to vector<8x2xf32>
      %114 = arith.subf %99, %113 : vector<8x2xf32>
      %cst_68 = arith.constant 9.99999974E-6 : f32
      %115 = vector.broadcast %cst_68 : f32 to vector<1x2xf32>
      %116 = arith.addf %112, %115 : vector<1x2xf32>
      %117 = math.rsqrt %116 : vector<1x2xf32>
      %118 = vector.broadcast %117 : vector<1x2xf32> to vector<8x2xf32>
      %119 = arith.mulf %114, %118 : vector<8x2xf32>
      %120 = vector.broadcast %100 : vector<1x2xf32> to vector<8x2xf32>
      %121 = arith.mulf %119, %120 : vector<8x2xf32>
      %122 = vector.broadcast %101 : vector<1x2xf32> to vector<8x2xf32>
      %123 = arith.addf %121, %122 : vector<8x2xf32>
      %124 = math.tanh %123 : vector<8x2xf32>
      %cst_69 = arith.constant dense<0xFF800000> : vector<8xf32>
      %125 = vector.multi_reduction <maximumf>, %124, %cst_69 [1] : vector<8x2xf32> to vector<8xf32>
      %126 = vector.shape_cast %125 : vector<8xf32> to vector<8x1xf32>
      %127 = vector.broadcast %126 : vector<8x1xf32> to vector<8x2xf32>
      %128 = arith.subf %124, %127 : vector<8x2xf32>
      %129 = math.exp %128 : vector<8x2xf32>
      %cst_70 = arith.constant dense<0.000000e+00> : vector<8xf32>
      %130 = vector.multi_reduction <add>, %129, %cst_70 [1] : vector<8x2xf32> to vector<8xf32>
      %131 = vector.shape_cast %130 : vector<8xf32> to vector<8x1xf32>
      %132 = vector.broadcast %131 : vector<8x1xf32> to vector<8x2xf32>
      %133 = arith.divf %129, %132 : vector<8x2xf32>
      %c0_71 = arith.constant 0 : index
      %c0_72 = arith.constant 0 : index
      %134 = vector.load %arg22[%c0_71, %c0_72] : memref<8x2xf32, #tpu.memory_space<vmem>>, vector<8x2xf32>
      tpu.vector_store %arg22[%c0_71, %c0_72], %133 {strides = array<i32>} : memref<8x2xf32, #tpu.memory_space<vmem>>, vector<8x2xf32>,
      %c0_73 = arith.constant 0 : index
      %c0_74 = arith.constant 0 : index
      %135 = vector.load %arg1[%c0_73, %c0_74] : memref<8x1024xf32, #tpu.memory_space<vmem>>, vector<8x1024xf32>
      %136 = vector.extract_strided_slice %133 {offsets = [0, 0], sizes = [8, 1], strides = [1, 1]} : vector<8x2xf32> to vector<8x1xf32>
      %137 = vector.broadcast %136 : vector<8x1xf32> to vector<8x1024xf32>
      %138 = arith.mulf %135, %137 : vector<8x1024xf32>
      %c0_75 = arith.constant 0 : index
      %c0_76 = arith.constant 0 : index
      %139 = vector.load %arg20[%c0_75, %c0_76] : memref<8x1024xf32, #tpu.memory_space<vmem>>, vector<8x1024xf32>
      tpu.vector_store %arg20[%c0_75, %c0_76], %138 {strides = array<i32>} : memref<8x1024xf32, #tpu.memory_space<vmem>>, vector<8x1024xf32>,
      %c0_77 = arith.constant 0 : index
      %c0_78 = arith.constant 0 : index
      %140 = vector.load %arg2[%c0_77, %c0_78] : memref<8x512xf32, #tpu.memory_space<vmem>>, vector<8x512xf32>
      %141 = vector.extract_strided_slice %133 {offsets = [0, 1], sizes = [8, 1], strides = [1, 1]} : vector<8x2xf32> to vector<8x1xf32>
      %142 = vector.broadcast %141 : vector<8x1xf32> to vector<8x512xf32>
      %143 = arith.mulf %140, %142 : vector<8x512xf32>
      %c0_79 = arith.constant 0 : index
      %c0_80 = arith.constant 0 : index
      %144 = vector.load %arg21[%c0_79, %c0_80] : memref<8x512xf32, #tpu.memory_space<vmem>>, vector<8x512xf32>
      tpu.vector_store %arg21[%c0_79, %c0_80], %143 {strides = array<i32>} : memref<8x512xf32, #tpu.memory_space<vmem>>, vector<8x512xf32>,
    } else {
    }
    return
  }
  func.func @transform_0(%arg0: i32) -> (i32, i32) {
    %c0_i32 = arith.constant 0 : i32
    %c0_i32_0 = arith.constant 0 : i32
    %c0_i32_1 = arith.constant 0 : i32
    return %c0_i32, %c0_i32_0 : i32, i32
  }
  func.func @transform_1(%arg0: i32) -> (i32, i32) {
    %c0_i32 = arith.constant 0 : i32
    %c0_i32_0 = arith.constant 0 : i32
    %c0_i32_1 = arith.constant 0 : i32
    return %c0_i32, %c0_i32_0 : i32, i32
  }
  func.func @transform_2(%arg0: i32) -> (i32, i32) {
    %c0_i32 = arith.constant 0 : i32
    %c0_i32_0 = arith.constant 0 : i32
    return %arg0, %c0_i32 : i32, i32
  }
  func.func @transform_3(%arg0: i32) -> (i32, i32) {
    %c0_i32 = arith.constant 0 : i32
    %c0_i32_0 = arith.constant 0 : i32
    %c0_i32_1 = arith.constant 0 : i32
    return %c0_i32, %c0_i32_0 : i32, i32
  }
  func.func @transform_4(%arg0: i32) -> (i32, i32) {
    %c0_i32 = arith.constant 0 : i32
    %c0_i32_0 = arith.constant 0 : i32
    return %arg0, %c0_i32 : i32, i32
  }
  func.func @transform_5(%arg0: i32) -> (i32, i32) {
    %c0_i32 = arith.constant 0 : i32
    %c0_i32_0 = arith.constant 0 : i32
    %c0_i32_1 = arith.constant 0 : i32
    return %c0_i32, %c0_i32_0 : i32, i32
  }
  func.func @transform_6(%arg0: i32) -> (i32, i32) {
    %c0_i32 = arith.constant 0 : i32
    %c0_i32_0 = arith.constant 0 : i32
    %c0_i32_1 = arith.constant 0 : i32
    return %c0_i32, %c0_i32_0 : i32, i32
  }
  func.func @transform_7(%arg0: i32) -> (i32, i32) {
    %c0_i32 = arith.constant 0 : i32
    %c0_i32_0 = arith.constant 0 : i32
    %c0_i32_1 = arith.constant 0 : i32
    return %c0_i32, %c0_i32_0 : i32, i32
  }
  func.func @transform_8(%arg0: i32) -> (i32, i32) {
    %c0_i32 = arith.constant 0 : i32
    %c0_i32_0 = arith.constant 0 : i32
    %c0_i32_1 = arith.constant 0 : i32
    return %c0_i32, %c0_i32_0 : i32, i32
  }
  func.func @transform_9(%arg0: i32) -> (i32, i32) {
    %c0_i32 = arith.constant 0 : i32
    %c0_i32_0 = arith.constant 0 : i32
    %c0_i32_1 = arith.constant 0 : i32
    return %c0_i32, %c0_i32_0 : i32, i32
  }
  func.func @transform_10(%arg0: i32) -> (i32, i32) {
    %c0_i32 = arith.constant 0 : i32
    %c0_i32_0 = arith.constant 0 : i32
    %c0_i32_1 = arith.constant 0 : i32
    return %c0_i32, %c0_i32_0 : i32, i32
  }
  func.func @transform_11(%arg0: i32) -> (i32, i32) {
    %c0_i32 = arith.constant 0 : i32
    %c0_i32_0 = arith.constant 0 : i32
    %c0_i32_1 = arith.constant 0 : i32
    return %c0_i32, %c0_i32_0 : i32, i32
  }
  func.func @transform_12(%arg0: i32) -> (i32, i32) {
    %c0_i32 = arith.constant 0 : i32
    %c0_i32_0 = arith.constant 0 : i32
    %c0_i32_1 = arith.constant 0 : i32
    return %c0_i32, %c0_i32_0 : i32, i32
  }
  func.func @transform_13(%arg0: i32) -> (i32, i32) {
    %c0_i32 = arith.constant 0 : i32
    %c0_i32_0 = arith.constant 0 : i32
    %c0_i32_1 = arith.constant 0 : i32
    return %c0_i32, %c0_i32_0 : i32, i32
  }
  func.func @transform_14(%arg0: i32) -> (i32, i32) {
    %c0_i32 = arith.constant 0 : i32
    %c0_i32_0 = arith.constant 0 : i32
    %c0_i32_1 = arith.constant 0 : i32
    return %c0_i32, %c0_i32_0 : i32, i32
  }
  func.func @transform_15(%arg0: i32) -> (i32, i32) {
    %c0_i32 = arith.constant 0 : i32
    %c0_i32_0 = arith.constant 0 : i32
    %c0_i32_1 = arith.constant 0 : i32
    return %c0_i32, %c0_i32_0 : i32, i32
  }
  func.func @transform_16(%arg0: i32) -> (i32, i32) {
    %c0_i32 = arith.constant 0 : i32
    %c0_i32_0 = arith.constant 0 : i32
    %c0_i32_1 = arith.constant 0 : i32
    return %c0_i32, %c0_i32_0 : i32, i32
  }
  func.func @transform_17(%arg0: i32) -> (i32, i32) {
    %c0_i32 = arith.constant 0 : i32
    %c0_i32_0 = arith.constant 0 : i32
    %c0_i32_1 = arith.constant 0 : i32
    return %c0_i32, %c0_i32_0 : i32, i32
  }
  func.func @transform_18(%arg0: i32) -> (i32, i32) {
    %c0_i32 = arith.constant 0 : i32
    %c0_i32_0 = arith.constant 0 : i32
    %c0_i32_1 = arith.constant 0 : i32
    return %c0_i32, %c0_i32_0 : i32, i32
  }
  func.func @transform_19(%arg0: i32) -> (i32, i32) {
    %c0_i32 = arith.constant 0 : i32
    %c0_i32_0 = arith.constant 0 : i32
    %c0_i32_1 = arith.constant 0 : i32
    return %c0_i32, %c0_i32_0 : i32, i32
  }
  func.func @transform_20(%arg0: i32) -> (i32, i32) {
    %c0_i32 = arith.constant 0 : i32
    %c0_i32_0 = arith.constant 0 : i32
    %c0_i32_1 = arith.constant 0 : i32
    return %c0_i32, %c0_i32_0 : i32, i32
  }
  func.func @transform_21(%arg0: i32) -> (i32, i32) {
    %c0_i32 = arith.constant 0 : i32
    %c0_i32_0 = arith.constant 0 : i32
    %c0_i32_1 = arith.constant 0 : i32
    return %c0_i32, %c0_i32_0 : i32, i32
  }
}

</mosaic_0001>

<bundles_post_ra>
// kernel: tpu_custom_call.1
= control target key start
LH: loop header
LB: loop body
LE: loop exit
PB: predicated region body
PF: predicated region fallthrough
CT: control target
= control target key end

     0   :  { %s3335_s0 = inlined_call_operand.vmem [shape: f32[8,1024], index: 0, kind: input, shape index: {}]   ;;  %s3336_s1 = inlined_call_operand.hbm [shape: f32[8,512], index: 1, kind: input, shape index: {}]   ;;  %s3337_s2 = inlined_call_operand.hbm [shape: f32[1024,128], index: 2, kind: input, shape index: {}]   ;;  %s3338_s3 = inlined_call_operand.hbm [shape: f32[1,128], index: 3, kind: input, shape index: {}]   ;;  %s3339_s4 = inlined_call_operand.hbm [shape: f32[512,128], index: 4, kind: input, shape index: {}]   ;;  %s3340_s5 = inlined_call_operand.hbm [shape: f32[1,128], index: 5, kind: input, shape index: {}]   ;;  %s3341_s6 = inlined_call_operand.vmem [shape: f32[128,128], index: 6, kind: input, shape index: {}]   ;;  %s3342_s7 = inlined_call_operand.hbm [shape: f32[128,128], index: 7, kind: input, shape index: {}]   ;;  %s3343_s8 = inlined_call_operand.hbm [shape: f32[1,128], index: 8, kind: input, shape index: {}]   ;;  %s3344_s9 = inlined_call_operand.vmem [shape: f32[1,128], index: 9, kind: input, shape index: {}]   ;;  %s3345_s10 = inlined_call_operand.vmem [shape: f32[1,128], index: 10, kind: input, shape index: {}]   ;;  %s3346_s11 = inlined_call_operand.vmem [shape: f32[128,32], index: 11, kind: input, shape index: {}]   ;;  %s3347_s12 = inlined_call_operand.vmem [shape: f32[1,32], index: 12, kind: input, shape index: {}]   ;;  %s3348_s13 = inlined_call_operand.vmem [shape: f32[1,32], index: 13, kind: input, shape index: {}]   ;;  %s3349_s14 = inlined_call_operand.vmem [shape: f32[1,32], index: 14, kind: input, shape index: {}]   ;;  %s3350_s15 = inlined_call_operand.vmem [shape: f32[32,2], index: 15, kind: input, shape index: {}]   ;;  %s3351_s16 = inlined_call_operand.vmem [shape: f32[1,2], index: 16, kind: input, shape index: {}]   ;;  %s3352_s17 = inlined_call_operand.vmem [shape: f32[1,2], index: 17, kind: input, shape index: {}]   ;;  %s3353_s18 = inlined_call_operand.vmem [shape: f32[1,2], index: 18, kind: input, shape index: {}]   ;;  %s3354_s19 = inlined_call_operand.hbm [shape: f32[8,1024], index: 19, kind: output, shape index: {0}]   ;;  %s3355_s20 = inlined_call_operand.hbm [shape: f32[8,512], index: 20, kind: output, shape index: {1}]   ;;  %s3356_s21 = inlined_call_operand.vmem [shape: f32[8,2], index: 21, kind: output, shape index: {2}]  }
   0x1   :  { %3372 = sst [smem:[#allocation27_spill]] %s3335_s0 }
   0x2   :  { %3373 = sst [smem:[#allocation28_spill]] %s3336_s1 }
   0x3   :  { %3374 = sst [smem:[#allocation29_spill]] %s3337_s2 }
   0x4   :  { %3375 = sst [smem:[#allocation30_spill]] %s3338_s3 }
   0x5   :  { %3376 = sst [smem:[#allocation31_spill]] %s3339_s4 }
   0x6   :  { %3377 = sst [smem:[#allocation32_spill]] %s3340_s5 }
   0x7   :  { %3378 = sst [smem:[#allocation33_spill]] %s3342_s7 }
   0x8   :  { %3379 = sst [smem:[#allocation34_spill]] %s3347_s12 }
   0x9   :  { %3380 = sst [smem:[#allocation35_spill]] %s3348_s13 }
   0xa   :  { %3381 = sst [smem:[#allocation36_spill]] %s3349_s14 }
   0xb   :  { %3382 = sst [smem:[#allocation37_spill]] %s3350_s15 }
   0xc   :  { %3383 = sst [smem:[#allocation38_spill]] %s3351_s16 }
   0xd   :  { %3384 = sst [smem:[#allocation39_spill]] %s3352_s17 }
   0xe   :  { %3385 = sst [smem:[#allocation40_spill]] %s3353_s18 }
   0xf   :  { %3386 = sst [smem:[#allocation41_spill]] %s3354_s19 }
  0x10   :  { %3387 = sst [smem:[#allocation42_spill]] %s3355_s20 }
  0x11   :  { %3388 = sst [smem:[#allocation43_spill]] %s3356_s21 }
  0x12   :  { %27 = vsyncpa [#allocation5], 0 }
  0x13   :  { %28 = vsyncpa [#allocation8], 0 }
  0x14   :  { %30 = vsyncpa [#allocation8 + $0x1], 0 }
  0x15   :  { %31 = vsyncpa [#allocation11], 0 }
  0x16   :  { %33 = vsyncpa [#allocation11 + $0x1], 0 }
  0x17   :  { %34 = vsyncpa [#allocation14], 0 }
  0x18   :  { %35 = vsyncpa [#allocation6], 0 }
  0x19   :  { %36 = vsyncpa [#allocation18], 0  ;;  %s2716_s2 = smov 0   ;;  %s2718_s25 = smov 0  }
  0x1a   :  { %s2720_s26 = smov 0   ;;  %s2722_s27 = smov 0  }
  0x1b LB: > { %s2735_s3 = sadd.s32 4294967295, %s2584_s27   ;;  %p104_p0 = scmp.ne.s32.totalorder %s2576_s25, %s2572_s2  ;;  %s2584_s27 = sphi %s2722_s27, %s3426_s27   ;;  %s2580_s26 = sphi %s2720_s26, %s3425_s26   ;;  %s2576_s25 = sphi %s2718_s25, %s3424_s25   ;;  %s2572_s2 = sphi %s2716_s2, %s3423_s2  }
  0x1c   : > { %p3365_p1 = scmp.eq.s32.totalorder %s2735_s3, 0  ;;  %p1691_p2 = scmp.ge.s32.totalorder %s2584_s27, 1 }
  0x1d   : > { %p519_p3 = scmp.lt.s32.totalorder %s2584_s27, 5  ;;  %s2586_s0 = smov [#allocation9]  }
  0x1e   : > { %p2744_p5 = por %p3365_p1, %p104_p0  ;;  %s546_s4 = sshll.u32 %s2586_s0, 4  ;;  %s547_s4 = int_to_ptr.vmem [resolvable:$true] %s546_s4 }
  0x1f   : > { %p2748_p6 = pnand %p1691_p2, %p519_p3  ;;  %s2587_s30 = smov [#allocation12]  }
  0x20   : > { %s3389_s28 = scalar_select %p2744_p5, 1, 0 }
  0x21   : > { %s3390_s29 = scalar_select %p2748_p6, 1, 0 }
  0x22   : > { %p2163_p7 = pneg %p2748_p6  ;;  %s557_s5 = sshll.u32 %s2587_s30, 4  ;;  %s2760_s5 = int_to_ptr.vmem [resolvable:$true] %s557_s5 }
  0x23   : > { %s2588_s23 = smov [#allocation13]   ;;  %s3392_s0 = sld [smem:[#allocation30_spill]] }
  0x24   : > { %p2756_p8 = pnand %p2163_p7, %p3365_p1  ;;  %s570_s1 = sshll.u32 %s2588_s23, 4  ;;  %s2762_s1 = int_to_ptr.vmem [resolvable:$true] %s570_s1 }
  0x26   : > { %p2772_p10 = pneg %p2756_p8 }
  0x29   : > { %s2270_s20 = scalar_lea.hbm %s3392_s0, 16 }
  0x2a   : > { %p2271_p9 = scmp.ne.s32.totalorder %s3392_s0, %s2270_s20  ;;  %p2277_p13 = scmp.lt.u32.totalorder %s2270_s20, %s3392_s0 }
  0x2c   : > { %p2273_p11 = pnand %p2772_p10, %p2271_p9 }
  0x2e   : > { %p2274_p12 = pneg %p2273_p11 }
  0x30   : > { %p2279_p0 = pnand %p2277_p13, %p2274_p12 }
  0x32   : > { %2282 = shalt.err (!%p2279_p0)
}
  0x33   : > { %s2283_s24 = scalar_lea.vmem %s547_s4, 16  ;;  %s2290_s19 = scalar_lea.vmem %s547_s4, 32 }
  0x34   : > { %p2284_p2 = scmp.ne.s32.totalorder %s547_s4, %s2283_s24  ;;  %p2291_p4 = scmp.lt.s32.totalorder %s547_s4, %s547_s4 }
  0x35   : > { %p2292_p1 = scmp.lt.s32.totalorder %s2290_s19, %s2283_s24 }
  0x36   : > { %p2286_p3 = pnand %p2284_p2, %p2772_p10 }
  0x37   : > { %p2293_p5 = por %p2292_p1, %p2291_p4 }
  0x38   : > { %p2287_p7 = pneg %p2286_p3 }
  0x3a   : > { %p2294_p6 = pnand %p2293_p5, %p2287_p7 }
  0x3c   : > { %2297 = shalt.err (!%p2294_p6)
}
  0x3d   : > { %2169 = dma.hbm_to_vmem [thread:$0]  (!%p2756_p8), %s3392_s0, 16, %s547_s4, [#allocation8]  }
  0x3e   : > { %s3394_s23 = sld [smem:[#allocation32_spill]] }
  0x44   : > { %s2298_s17 = scalar_lea.hbm %s3394_s23, 16 }
  0x45   : > { %p2299_p9 = scmp.ne.s32.totalorder %s3394_s23, %s2298_s17  ;;  %p2305_p4 = scmp.lt.u32.totalorder %s2298_s17, %s3394_s23 }
  0x47   : > { %p2301_p11 = pnand %p2299_p9, %p2772_p10 }
  0x49   : > { %p2302_p1 = pneg %p2301_p11 }
  0x4b   : > { %p2307_p5 = pnand %p2305_p4, %p2302_p1 }
  0x4d   : > { %2310 = shalt.err (!%p2307_p5)
}
  0x4e   : > { %s2311_s4 = scalar_lea.vmem %s2760_s5, 16  ;;  %s2318_s14 = scalar_lea.vmem %s2760_s5, 32 }
  0x4f   : > { %p2312_p6 = scmp.ne.s32.totalorder %s2760_s5, %s2311_s4  ;;  %p2319_p0 = scmp.lt.s32.totalorder %s2760_s5, %s2760_s5 }
  0x50   : > { %p2320_p2 = scmp.lt.s32.totalorder %s2318_s14, %s2311_s4 }
  0x51   : > { %p2314_p12 = pnand %p2312_p6, %p2772_p10 }
  0x52   : > { %p2321_p3 = por %p2320_p2, %p2319_p0 }
  0x53   : > { %p2315_p13 = pneg %p2314_p12 }
  0x55   : > { %p2322_p7 = pnand %p2321_p3, %p2315_p13 }
  0x57   : > { %2325 = shalt.err (!%p2322_p7)
}
  0x58   : > { %2172 = dma.hbm_to_vmem [thread:$0]  (!%p2756_p8), %s3394_s23, 16, %s2760_s5, [#allocation11]  }
  0x59   : > { %s3395_s7 = sld [smem:[#allocation33_spill]] }
  0x5f   : > { %s2326_s18 = scalar_lea.hbm %s3395_s7, 2048 }
  0x60   : > { %p2327_p9 = scmp.ne.s32.totalorder %s3395_s7, %s2326_s18  ;;  %p2333_p4 = scmp.lt.u32.totalorder %s2326_s18, %s3395_s7 }
  0x62   : > { %p2329_p11 = pnand %p2327_p9, %p2772_p10 }
  0x64   : > { %p2330_p1 = pneg %p2329_p11 }
  0x66   : > { %p2335_p5 = pnand %p2333_p4, %p2330_p1 }
  0x68   : > { %2338 = shalt.err (!%p2335_p5)
}
  0x69   : > { %s2339_s5 = scalar_lea.vmem %s2762_s1, 2048  ;;  %p2347_p0 = scmp.lt.s32.totalorder %s2762_s1, %s2762_s1 }
  0x6a   : > { %p2340_p6 = scmp.ne.s32.totalorder %s2762_s1, %s2339_s5  ;;  %p2348_p2 = scmp.lt.s32.totalorder %s2339_s5, %s2339_s5 }
  0x6c   : > { %p2342_p12 = pnand %p2340_p6, %p2772_p10  ;;  %p2349_p3 = por %p2348_p2, %p2347_p0 }
  0x6e   : > { %p2343_p13 = pneg %p2342_p12 }
  0x70   : > { %p2350_p7 = pnand %p2349_p3, %p2343_p13 }
  0x72   : > { %2353 = shalt.err (!%p2350_p7)
}
  0x73   : > { %s2589_s14 = smov 128   ;;  %s2590_s16 = smov 8  }
  0x74   : > { %2175 = dma.hbm_to_vmem [thread:$0]  (!%p2756_p8), %s3395_s7, 2048, %s2762_s1, [#allocation14], %s2589_s14, %s2589_s14, %s2590_s16  }
  0x75   : > { %s2591_s2 = smov [#allocation4]   ;;  %s2592_s20 = smov [#allocation15]  }
  0x76   : > { %s535_s18 = sshll.u32 %s2591_s2, 4  ;;  %s584_s24 = sshll.u32 %s2592_s20, 4  ;;  %s536_s18 = int_to_ptr.vmem [resolvable:$true] %s535_s18  ;;  %s585_s24 = int_to_ptr.vmem [resolvable:$true] %s584_s24 }
  0x77   : > { %s3396_s5 = sld [smem:[#allocation28_spill]] }
  0x7d   : > { %s2354_s0 = scalar_lea.hbm %s3396_s5, 512 }
  0x7e   : > { %p2355_p9 = scmp.ne.s32.totalorder %s3396_s5, %s2354_s0  ;;  %p2361_p4 = scmp.lt.u32.totalorder %s2354_s0, %s3396_s5 }
  0x80   : > { %p2357_p11 = pnand %p2355_p9, %p2772_p10 }
  0x82   : > { %p2358_p1 = pneg %p2357_p11 }
  0x84   : > { %p2363_p5 = pnand %p2361_p4, %p2358_p1 }
  0x86   : > { %2366 = shalt.err (!%p2363_p5)
}
  0x87   : > { %s2367_s1 = scalar_lea.vmem %s536_s18, 512  ;;  %p2375_p0 = scmp.lt.s32.totalorder %s536_s18, %s536_s18 }
  0x88   : > { %p2368_p6 = scmp.ne.s32.totalorder %s536_s18, %s2367_s1  ;;  %p2376_p2 = scmp.lt.s32.totalorder %s2367_s1, %s2367_s1 }
  0x8a   : > { %p2370_p12 = pnand %p2368_p6, %p2772_p10  ;;  %p2377_p3 = por %p2376_p2, %p2375_p0 }
  0x8c   : > { %p2371_p13 = pneg %p2370_p12 }
  0x8e   : > { %p2378_p7 = pnand %p2377_p3, %p2371_p13 }
  0x90   : > { %2381 = shalt.err (!%p2378_p7)
}
  0x91   : > { %2166 = dma.hbm_to_vmem [thread:$0]  (!%p2756_p8), %s3396_s5, 512, %s536_s18, [#allocation5]  }
  0x92   : > { %s2382_s0 = scalar_lea.hbm %s3343_s8, 16 }
  0x93   : > { %p2383_p9 = scmp.ne.s32.totalorder %s3343_s8, %s2382_s0  ;;  %p2389_p4 = scmp.lt.u32.totalorder %s2382_s0, %s3343_s8 }
  0x95   : > { %p2385_p11 = pnand %p2383_p9, %p2772_p10 }
  0x97   : > { %p2386_p1 = pneg %p2385_p11 }
  0x99   : > { %p2391_p5 = pnand %p2389_p4, %p2386_p1 }
  0x9b   : > { %2394 = shalt.err (!%p2391_p5)
}
  0x9c   : > { %s2395_s19 = scalar_lea.vmem %s585_s24, 16  ;;  %s2402_s18 = scalar_lea.vmem %s585_s24, 32 }
  0x9d   : > { %p2396_p6 = scmp.ne.s32.totalorder %s585_s24, %s2395_s19  ;;  %p2403_p0 = scmp.lt.s32.totalorder %s585_s24, %s585_s24 }
  0x9e   : > { %p2404_p2 = scmp.lt.s32.totalorder %s2402_s18, %s2395_s19 }
  0x9f   : > { %p2398_p12 = pnand %p2396_p6, %p2772_p10 }
  0xa0   : > { %p2405_p3 = por %p2404_p2, %p2403_p0 }
  0xa1   : > { %p2399_p13 = pneg %p2398_p12 }
  0xa3   : > { %p2406_p7 = pnand %p2405_p3, %p2399_p13 }
  0xa5   : > { %2409 = shalt.err (!%p2406_p7)
}
  0xa6   : > { %2178 = dma.hbm_to_vmem [thread:$0]  (!%p2756_p8), %s3343_s8, 16, %s585_s24, [#allocation14]  }
  0xa7   : > { %s2875_s30 = sadd.s32 1, %s2584_s27   ;;  %s91_s22 = sadd.s32 1, %s2580_s26 }
  0xa8   : > { %s88_s13 = ssub.s32 %s2584_s27, %s2875_s30  ;;  %p98_p9 = scmp.ne.s32.totalorder %s2580_s26, %s2576_s25 }
  0xa9   : > { %p89_p10 = scmp.eq.s32.totalorder %s88_s13, 0  ;;  %p99_p11 = scmp.eq.s32.totalorder %s2584_s27, 0 }
  0xaa   : > { %p2191_p1 = scmp.lt.s32.totalorder %s2584_s27, 4  ;;  %s625_s12 = sand.u32 1, %s2584_s27  }
  0xab   : > { %s2885_s23 = scalar_select %p89_p10, %s2580_s26, %s91_s22  }
  0xac   : > { %p100_p4 = por %p99_p11, %p98_p9  ;;  %s627_s15 = sand.u32 1, %s2580_s26  }
  0xad   : > { %s1698_s0 = sshll.u32 %s627_s15, 8  ;;  %s1736_s17 = sshll.u32 %s2584_s27, 12 }
  0xae   : > { %s3397_s24 = sld [smem:[#allocation29_spill]]  ;;  %s629_s19 = scalar_lea.vmem [#allocation7], %s1698_s0 }
  0xaf   : > { %s636_s18 = sshll.u32 %s629_s19, 4  ;;  %p2895_p8 = pnand %p2191_p1, %p100_p4  ;;  %s2899_s18 = int_to_ptr.vmem [resolvable:$true] %s636_s18 }
  0xb0   : > { %s2901_s1 = sshll.u32 %s627_s15, 7  ;;  %s2905_s13 = scalar_lea.sflag [#allocation8], %s625_s12 }
  0xb1   : > { %p2412_p6 = pneg %p2895_p8 }
  0xb4   : > { %s2893_s20 = scalar_lea.hbm %s3397_s24, %s1736_s17  ;;  %s2415_s21 = scalar_lea.hbm %s3397_s24, 16384 }
  0xb5   : > { %s2410_s22 = scalar_lea.hbm %s2893_s20, 4096  ;;  %p2416_p0 = scmp.lt.u32.totalorder %s2893_s20, %s3397_s24 }
  0xb6   : > { %p2411_p5 = scmp.ne.s32.totalorder %s2893_s20, %s2410_s22  ;;  %p2417_p2 = scmp.lt.u32.totalorder %s2415_s21, %s2410_s22 }
  0xb7   : > { %p2419_p7 = scmp.lt.u32.totalorder %s2410_s22, %s2893_s20 }
  0xb8   : > { %p2413_p12 = pnand %p2412_p6, %p2411_p5  ;;  %p2418_p3 = por %p2417_p2, %p2416_p0 }
  0xba   : > { %p2414_p13 = pneg %p2413_p12  ;;  %p2420_p10 = por %p2419_p7, %p2418_p3 }
  0xbc   : > { %p2421_p9 = pnand %p2420_p10, %p2414_p13 }
  0xbe   : > { %2424 = shalt.err (!%p2421_p9)
}
  0xbf   : > { %s2425_s15 = scalar_lea.vmem %s2899_s18, 4096  ;;  %s2593_s0 = smov [#allocation7]  }
  0xc0   : > { %p2426_p11 = scmp.ne.s32.totalorder %s2899_s18, %s2425_s15  ;;  %s2430_s17 = sshll.u32 %s2593_s0, 4  ;;  %s2431_s17 = int_to_ptr.vmem [resolvable:$false] %s2430_s17 }
  0xc1   : > { %s2432_s2 = scalar_lea.vmem %s2431_s17, 8192  ;;  %p2433_p5 = scmp.lt.s32.totalorder %s2899_s18, %s2431_s17 }
  0xc2   : > { %p2428_p1 = pnand %p2426_p11, %p2412_p6  ;;  %p2434_p12 = scmp.lt.s32.totalorder %s2432_s2, %s2425_s15 }
  0xc4   : > { %p2429_p4 = pneg %p2428_p1  ;;  %p2435_p0 = por %p2434_p12, %p2433_p5 }
  0xc6   : > { %p2436_p2 = pnand %p2435_p0, %p2429_p4 }
  0xc8   : > { %2439 = shalt.err (!%p2436_p2)
}
  0xc9   : > { %2182 = dma.hbm_to_vmem [thread:$0]  (!%p2895_p8), %s2893_s20, 4096, %s2899_s18, %s2905_s13, %s2589_s14, %s2589_s14, %s2590_s16  }
  0xca   : > { %s1737_s22 = sshll.u32 %s2584_s27, 11  ;;  %s3399_s15 = sld [smem:[#allocation31_spill]] }
  0xcb   : > { %s650_s17 = scalar_lea.vmem [#allocation10], %s2901_s1  ;;  %s2947_s5 = scalar_lea.sflag [#allocation11], %s625_s12 }
  0xcc   : > { %s657_s2 = sshll.u32 %s650_s17, 4  ;;  %s2943_s2 = int_to_ptr.vmem [resolvable:$true] %s657_s2 }
  0xd0   : > { %s2940_s0 = scalar_lea.hbm %s3399_s15, %s1737_s22  ;;  %s2445_s13 = scalar_lea.hbm %s3399_s15, 8192 }
  0xd1   : > { %s2440_s7 = scalar_lea.hbm %s2940_s0, 2048  ;;  %p2446_p10 = scmp.lt.u32.totalorder %s2940_s0, %s3399_s15 }
  0xd2   : > { %p2441_p13 = scmp.ne.s32.totalorder %s2940_s0, %s2440_s7  ;;  %p2447_p9 = scmp.lt.u32.totalorder %s2445_s13, %s2440_s7 }
  0xd3   : > { %p2449_p1 = scmp.lt.u32.totalorder %s2440_s7, %s2940_s0 }
  0xd4   : > { %p2443_p3 = pnand %p2441_p13, %p2412_p6  ;;  %p2448_p11 = por %p2447_p9, %p2446_p10 }
  0xd6   : > { %p2444_p7 = pneg %p2443_p3  ;;  %p2450_p4 = por %p2449_p1, %p2448_p11 }
  0xd8   : > { %p2451_p5 = pnand %p2450_p4, %p2444_p7 }
  0xda   : > { %2454 = shalt.err (!%p2451_p5)
}
  0xdb   : > { %s2455_s27 = scalar_lea.vmem %s2943_s2, 2048  ;;  %s2594_s12 = smov [#allocation10]  }
  0xdc   : > { %p2456_p12 = scmp.ne.s32.totalorder %s2943_s2, %s2455_s27  ;;  %s2460_s1 = sshll.u32 %s2594_s12, 4  ;;  %s2461_s1 = int_to_ptr.vmem [resolvable:$false] %s2460_s1 }
  0xdd   : > { %s2462_s19 = scalar_lea.vmem %s2461_s1, 4096  ;;  %p2463_p13 = scmp.lt.s32.totalorder %s2943_s2, %s2461_s1 }
  0xde   : > { %p2458_p0 = pnand %p2456_p12, %p2412_p6  ;;  %p2464_p3 = scmp.lt.s32.totalorder %s2462_s19, %s2455_s27 }
  0xe0   : > { %p2459_p2 = pneg %p2458_p0  ;;  %p2465_p10 = por %p2464_p3, %p2463_p13 }
  0xe2   : > { %p2466_p9 = pnand %p2465_p10, %p2459_p2 }
  0xe4   : > { %2469 = shalt.err (!%p2466_p9)
}
  0xe5   : > { %2185 = dma.hbm_to_vmem [thread:$0]  (!%p2895_p8), %s2940_s0, 2048, %s2943_s2, %s2947_s5, %s2589_s14, %s2589_s14, %s2590_s16  }
  0xe6   : > { %p3400_p6 = scmp.ne.s32.totalorder %s3390_s29, 0 }
  0xe7   : > { %p3401_p7 = scmp.eq.s32.totalorder (!%p3400_p6), %s2735_s3, 0 }
  0xe8   : > { %669 = sbr.rel (%p3400_p6) target bundleno = 1873 (0x751), region = 96 }
  0xef   : > { %2539 = dma.done.wait (%p3401_p7), [#allocation5], 512   ;;  %p3402_p11 = pmov %p3401_p7 }
  0xf0   : > { %s675_s7 = sand.u32 1, %s2735_s3   ;;  %s677_s4 = sand.u32 1, %s2576_s25  }
  0xf1   : > { %2541 = vsyncadd (%p3402_p11), [#allocation5], 4294966784  ;;  %s1706_s17 = sshll.u32 %s677_s4, 8  ;;  %s676_s20 = scalar_lea.sflag [#allocation8], %s675_s7 }
  0xf2   : > { %s2984_s18 = scalar_lea.vmem [#allocation7], %s1706_s17  ;;  %p3403_p1 = scmp.ne.s32.totalorder %s3389_s28, 0 }
  0xf4   : > { %2543 = dma.done.wait (%p3403_p1), %s676_s20, 4096  }
  0xf5   : > { %2545 = vsyncadd (%p3403_p1), %s676_s20, 4294963200  ;;  %p3404_p8 = pmov %p3401_p7 }
  0xf6   : > { %p3405_p4 = pmov %p3401_p7 }
  0xf7   : > { %2547 = dma.done.wait (%p3404_p8), [#allocation8], 16  }
  0xf8   : > { %2549 = vsyncadd (%p3405_p4), [#allocation8], 4294967280  ;;  %s1708_s29 = sshll.u32 %s677_s4, 7  ;;  %s689_s14 = scalar_lea.sflag [#allocation11], %s675_s7 }
  0xf9   : > { %s2994_s16 = scalar_lea.vmem [#allocation10], %s1708_s29 }
  0xfa   : > { %2551 = dma.done.wait (%p3403_p1), %s689_s14, 2048  }
  0xfb   : > { %2553 = vsyncadd (%p3403_p1), %s689_s14, 4294965248  ;;  %p3406_p5 = pmov %p3405_p4 }
  0xfc   : > { %p3407_p12 = pmov %p3405_p4 }
  0xfd   : > { %2555 = dma.done.wait (%p3406_p5), [#allocation11], 16  }
  0xfe   : > { %2557 = vsyncadd (%p3407_p12), [#allocation11], 4294967280  ;;  %p3408_p0 = pmov %p3405_p4 }
 0x100   : > { %2559 = dma.done.wait (%p3408_p0), [#allocation14], 2064   ;;  %p3409_p2 = pmov %p3408_p0 }
 0x101   : > { %p3410_p13 = scmp.ne.s32.totalorder %s2735_s3, 0 }
 0x102   : > { %2561 = vsyncadd (%p3409_p2), [#allocation14], 4294965232  ;;  %v2595_v0 = vmov (!%p3410_p13), 0.0  }
 0x103   : > { %768 = sbr.rel (%p3410_p13) target bundleno = 266 (0x10a), region = 128  ;;  %769 = vst [vmem:[#allocation2] sm:$0xff] (!%p3410_p13), %v2595_v0  ;;  %770 = vst [vmem:[#allocation3] sm:$0xff] (!%p3410_p13), %v2595_v0 }
 0x10a PF: > { %v801_v1 = vld [vmem:[%s2984_s18 + $0x80] sm:$0xff]  ;;  %v802_v2 = vld [vmem:[%s2984_s18 + $0x88] sm:$0xff]  ;;  %v2596_v6 = vmov 0.0|0.0   ;;  %v803_v11 = vld [vmem:[%s2984_s18 + $0x90] sm:$0xff]  ;;  %vm2597_vm0 = vmmov 0   ;;  %v2598_v14 = vmov 0.0  }
 0x10b   : > { %v785_v3 = vld [vmem:[%s2984_s18] sm:$0xff]  ;;  %v1997_v4 = vpack.c.bf16 %v802_v2, %v801_v1  ;;  %v786_v5 = vld [vmem:[%s2984_s18 + $0x8] sm:$0xff]  ;;  %2029 = vmatprep.subr.bf16.mxu1 %v2596_v6  ;;  %v804_v12 = vld [vmem:[%s2984_s18 + $0x98] sm:$0xff]  ;;  %1878 = vmatprep.mubr.msk.f32.mxu1 %vm2597_vm0, %v2598_v14  ;;  %s1713_s28 = sshll.u32 %s2735_s3, 8  ;;  %s3411_s22 = sld [smem:[#allocation27_spill]] }
 0x10c   : > { %v890_v7 = vld [vmem:[%s2994_s16] sm:$0xff]  ;;  %v891_v8 = vld [vmem:[%s2994_s16 + $0x8] sm:$0xff]  ;;  %v1999_v9 = vpack.c.bf16 %v786_v5, %v785_v3  ;;  %v2001_v15 = vpack.c.bf16 %v804_v12, %v803_v11  ;;  %v788_v16 = vld [vmem:[%s2984_s18 + $0x18] sm:$0xff]  ;;  %s773_s5 = sshra.s32 %s1713_s28, 7  ;;  %s1714_s27 = sshll.u32 %s2735_s3, 7 }
 0x10d   : > { %v2030_v10 = vpack.c.bf16 %v891_v8, %v890_v7  ;;  %v787_v13 = vld [vmem:[%s2984_s18 + $0x10] sm:$0xff]  ;;  %1998 = vmatprep.subr.bf16.mxu0 %v1997_v4  ;;  %v893_v18 = vld [vmem:[%s2994_s16 + $0x18] sm:$0xff]  ;;  %v806_v22 = vld [vmem:[%s2984_s18 + $0xa8] sm:$0xff]  ;;  %s1715_s0 = sshll.u32 %s773_s5, 3  ;;  %s779_s12 = sshra.s32 %s1714_s27, 7 }
 0x10e   : > { %v892_v17 = vld [vmem:[%s2994_s16 + $0x10] sm:$0xff]  ;;  %2000 = vmatpush3.bf16.msra.mxu0 %v1999_v9  ;;  %v2003_v19 = vpack.c.bf16 %v788_v16, %v787_v13  ;;  %v805_v21 = vld [vmem:[%s2984_s18 + $0xa0] sm:$0xff]  ;;  %v790_v25 = vld [vmem:[%s2984_s18 + $0x28] sm:$0xff]  ;;  %s1716_s1 = sshll.u32 %s779_s12, 3  ;;  %p1717_p3 = scmp.ne.s32.totalorder %s2735_s3, 3 }
 0x10f   : > { %2031 = vmatpush3.bf16.msra.mxu1 %v2030_v10  ;;  %v2033_v20 = vpack.c.bf16 %v893_v18, %v892_v17  ;;  %v789_v23 = vld [vmem:[%s2984_s18 + $0x20] sm:$0xff]  ;;  %2002 = vmatprep.subr.bf16.mxu0 %v2001_v15  ;;  %v2005_v24 = vpack.c.bf16 %v806_v22, %v805_v21  ;;  %v895_v27 = vld [vmem:[%s2994_s16 + $0x28] sm:$0xff]  ;;  %v808_v29 = vld [vmem:[%s2984_s18 + $0xb8] sm:$0xff]  ;;  %s782_s19 = scalar_lea.vmem [#allocation4], %s1716_s1  ;;  %vm2600_vm1 = vmmov (!%p1717_p3), 0   ;;  %s3413_s20 = sld [smem:[#allocation34_spill]] (!%p1717_p3) }
 0x110   : > { %2032 = vmatprep.subr.bf16.mxu1 %v2596_v6  ;;  %v894_v26 = vld [vmem:[%s2994_s16 + $0x20] sm:$0xff]  ;;  %v807_v28 = vld [vmem:[%s2984_s18 + $0xb0] sm:$0xff]  ;;  %v2007_v30 = vpack.c.bf16 %v790_v25, %v789_v23  ;;  %v792_v34 = vld [vmem:[%s2984_s18 + $0x38] sm:$0xff]  ;;  %vm1312_vm2 = vcmask (!%p1717_p3), 261120   ;;  %s3414_s14 = sld [smem:[#allocation35_spill]] (!%p1717_p3)  ;;  %s3415_s5 = sld [smem:[#allocation36_spill]] (!%p1717_p3) }
 0x111   : > { %v2036_v31 = vpack.c.bf16 %v895_v27, %v894_v26  ;;  %v791_v32 = vld [vmem:[%s2984_s18 + $0x30] sm:$0xff]  ;;  %v2009_v33 = vpack.c.bf16 %v808_v29, %v807_v28  ;;  %v897_v36 = vld [vmem:[%s2994_s16 + $0x38] sm:$0xff]  ;;  %v810_v38 = vld [vmem:[%s2984_s18 + $0xc8] sm:$0xff]  ;;  %s3044_s21 = scalar_lea.vmem %s3411_s22, %s1715_s0  ;;  %v2599_v26 = vmov (!%p1717_p3), 0.0|0.0   ;;  %s3412_s22 = sld [smem:[#allocation37_spill]] (!%p1717_p3)  ;;  %vm1435_vm3 = vcmask (!%p1717_p3), 15360  }
 0x112   : > { %2004 = vmatpush3.bf16.msra.mxu0 %v2003_v19  ;;  %v896_v35 = vld [vmem:[%s2994_s16 + $0x30] sm:$0xff]  ;;  %v809_v37 = vld [vmem:[%s2984_s18 + $0xc0] sm:$0xff]  ;;  %v2011_v39 = vpack.c.bf16 %v792_v34, %v791_v32  ;;  %v794_v43 = vld [vmem:[%s2984_s18 + $0x48] sm:$0xff]  ;;  %v2601_v34 = vmov (!%p1717_p3), 0.0   ;;  %s3416_s13 = sld [smem:[#allocation38_spill]] (!%p1717_p3)  ;;  %s3417_s12 = sld [smem:[#allocation39_spill]] (!%p1717_p3) }
 0x113   : > { %2034 = vmatpush3.bf16.msra.mxu1 %v2033_v20  ;;  %2006 = vmatprep.subr.bf16.mxu0 %v2005_v24  ;;  %v2039_v40 = vpack.c.bf16 %v897_v36, %v896_v35  ;;  %v793_v41 = vld [vmem:[%s2984_s18 + $0x40] sm:$0xff]  ;;  %v2013_v42 = vpack.c.bf16 %v810_v38, %v809_v37  ;;  %v899_v45 = vld [vmem:[%s2994_s16 + $0x48] sm:$0xff]  ;;  %v812_v47 = vld [vmem:[%s2984_s18 + $0xd8] sm:$0xff]  ;;  %s3418_s7 = sld [smem:[#allocation40_spill]] (!%p1717_p3) }
 0x114   : > { %2035 = vmatprep.subr.bf16.mxu1 %v2596_v6  ;;  %v898_v44 = vld [vmem:[%s2994_s16 + $0x40] sm:$0xff]  ;;  %v811_v46 = vld [vmem:[%s2984_s18 + $0xd0] sm:$0xff]  ;;  %v778_v48 = vld [vmem:[%s3044_s21 + $0x8] sm:$0xff]  ;;  %v2015_v49 = vpack.c.bf16 %v794_v43, %v793_v41 }
 0x115   : > { %v2042_v50 = vpack.c.bf16 %v899_v45, %v898_v44  ;;  %v795_v51 = vld [vmem:[%s2984_s18 + $0x50] sm:$0xff]  ;;  %v2017_v52 = vpack.c.bf16 %v812_v47, %v811_v46  ;;  %v796_v53 = vld [vmem:[%s2984_s18 + $0x58] sm:$0xff]  ;;  %v813_v56 = vld [vmem:[%s2984_s18 + $0xe0] sm:$0xff]  ;;  %881 = vmatprep.mubr.f32.mxu0 %v778_v48 }
 0x116   : > { %2008 = vmatpush3.bf16.msra.mxu0 %v2007_v30  ;;  %v900_v54 = vld [vmem:[%s2994_s16 + $0x50] sm:$0xff]  ;;  %v901_v55 = vld [vmem:[%s2994_s16 + $0x58] sm:$0xff]  ;;  %v814_v57 = vld [vmem:[%s2984_s18 + $0xe8] sm:$0xff]  ;;  %v2019_v58 = vpack.c.bf16 %v796_v53, %v795_v51 }
 0x117   : > { %2037 = vmatpush3.bf16.msra.mxu1 %v2036_v31  ;;  %2010 = vmatprep.subr.bf16.mxu0 %v2009_v33  ;;  %v2045_v59 = vpack.c.bf16 %v901_v55, %v900_v54  ;;  %v797_v60 = vld [vmem:[%s2984_s18 + $0x60] sm:$0xff]  ;;  %v2021_v61 = vpack.c.bf16 %v814_v57, %v813_v56  ;;  %v798_v62 = vld [vmem:[%s2984_s18 + $0x68] sm:$0xff]  ;;  %v815_v1 = vld [vmem:[%s2984_s18 + $0xf0] sm:$0xff] }
 0x118   : > { %2038 = vmatprep.subr.bf16.mxu1 %v2596_v6  ;;  %v902_v63 = vld [vmem:[%s2994_s16 + $0x60] sm:$0xff]  ;;  %v903_v0 = vld [vmem:[%s2994_s16 + $0x68] sm:$0xff]  ;;  %v816_v2 = vld [vmem:[%s2984_s18 + $0xf8] sm:$0xff]  ;;  %v2023_v3 = vpack.c.bf16 %v798_v62, %v797_v60 }
 0x119   : > { %v2048_v4 = vpack.c.bf16 %v903_v0, %v902_v63  ;;  %v799_v5 = vld [vmem:[%s2984_s18 + $0x70] sm:$0xff]  ;;  %v2025_v7 = vpack.c.bf16 %v816_v2, %v815_v1  ;;  %v800_v8 = vld [vmem:[%s2984_s18 + $0x78] sm:$0xff]  ;;  %v1002_v32 = vld [vmem:[%s3341_s6 + $0x10] sm:$0xff] (!%p1717_p3) }
 0x11a   : > { %2012 = vmatpush3.bf16.msra.mxu0 %v2011_v39  ;;  %v904_v9 = vld [vmem:[%s2994_s16 + $0x70] sm:$0xff]  ;;  %v905_v10 = vld [vmem:[%s2994_s16 + $0x78] sm:$0xff]  ;;  %v2027_v11 = vpack.c.bf16 %v800_v8, %v799_v5  ;;  %v1003_v33 = vld [vmem:[%s3341_s6 + $0x18] sm:$0xff] (!%p1717_p3) }
 0x11b   : > { %2040 = vmatpush3.bf16.msra.mxu1 %v2039_v40  ;;  %2014 = vmatprep.subr.bf16.mxu0 %v2013_v42  ;;  %v2051_v12 = vpack.c.bf16 %v905_v10, %v904_v9  ;;  %v777_v13 = vld [vmem:[%s3044_s21] sm:$0xff]  ;;  %v889_v15 = vld [vmem:[#allocation3] sm:$0xff]  ;;  %v2081_v36 = vpack.c.bf16 (!%p1717_p3), %v1003_v33, %v1002_v32  ;;  %v1020_v37 = vld [vmem:[#allocation13 + $0x20] sm:$0xff] (!%p1717_p3) }
 0x11c   : > { %2041 = vmatprep.subr.bf16.mxu1 %v2596_v6  ;;  %v783_v14 = vld [vmem:[%s782_s19] sm:$0xff]  ;;  %v1001_v28 = vld [vmem:[%s3341_s6 + $0x8] sm:$0xff] (!%p1717_p3)  ;;  %v1006_v45 = vld [vmem:[%s3341_s6 + $0x30] sm:$0xff] (!%p1717_p3) }
 0x11d   : > { %v784_v18 = vld [vmem:[#allocation2] sm:$0xff]  ;;  %v1019_v30 = vld [vmem:[#allocation13 + $0x18] sm:$0xff] (!%p1717_p3)  ;;  %v1007_v46 = vld [vmem:[%s3341_s6 + $0x38] sm:$0xff] (!%p1717_p3) }
 0x11e   : > { %2016 = vmatpush3.bf16.msra.mxu0 %v2015_v49  ;;  %v1017_v24 = vld [vmem:[#allocation13 + $0x8] sm:$0xff] (!%p1717_p3)  ;;  %v1018_v29 = vld [vmem:[#allocation13 + $0x10] sm:$0xff] (!%p1717_p3)  ;;  %v1023_v44 = vld [vmem:[#allocation13 + $0x38] sm:$0xff] (!%p1717_p3)  ;;  %v2087_v48 = vpack.c.bf16 (!%p1717_p3), %v1007_v46, %v1006_v45 }
 0x11f   : > { %2043 = vmatpush3.bf16.msra.mxu1 %v2042_v50  ;;  %2018 = vmatprep.subr.bf16.mxu0 %v2017_v52  ;;  %v1000_v25 = vld [vmem:[%s3341_s6] sm:$0xff] (!%p1717_p3)  ;;  %v2057_v35 = vpack.c.bf16 (!%p1717_p3), %v1019_v30, %v1018_v29  ;;  %v1005_v40 = vld [vmem:[%s3341_s6 + $0x28] sm:$0xff] (!%p1717_p3)  ;;  %v1024_v49 = vld [vmem:[#allocation13 + $0x40] sm:$0xff] (!%p1717_p3) }
 0x120   : > { %2044 = vmatprep.subr.bf16.mxu1 %v2596_v6  ;;  %v2078_v31 = vpack.c.bf16 (!%p1717_p3), %v1001_v28, %v1000_v25  ;;  %v1021_v38 = vld [vmem:[#allocation13 + $0x28] sm:$0xff] (!%p1717_p3)  ;;  %v1022_v43 = vld [vmem:[#allocation13 + $0x30] sm:$0xff] (!%p1717_p3)  ;;  %v1027_v56 = vld [vmem:[#allocation13 + $0x58] sm:$0xff] (!%p1717_p3) }
 0x121   : > { %v1004_v39 = vld [vmem:[%s3341_s6 + $0x20] sm:$0xff] (!%p1717_p3)  ;;  %v2060_v41 = vpack.c.bf16 (!%p1717_p3), %v1021_v38, %v1020_v37  ;;  %v2063_v47 = vpack.c.bf16 (!%p1717_p3), %v1023_v44, %v1022_v43  ;;  %v1009_v52 = vld [vmem:[%s3341_s6 + $0x48] sm:$0xff] (!%p1717_p3)  ;;  %v1010_v57 = vld [vmem:[%s3341_s6 + $0x50] sm:$0xff] (!%p1717_p3) }
 0x122   : > { %2020 = vmatpush3.bf16.msra.mxu0 %v2019_v58  ;;  %v2084_v42 = vpack.c.bf16 (!%p1717_p3), %v1005_v40, %v1004_v39  ;;  %v1025_v50 = vld [vmem:[#allocation13 + $0x48] sm:$0xff] (!%p1717_p3)  ;;  %v1026_v55 = vld [vmem:[#allocation13 + $0x50] sm:$0xff] (!%p1717_p3)  ;;  %v1014_v5 = vld [vmem:[%s3341_s6 + $0x70] sm:$0xff] (!%p1717_p3) }
 0x123   : > { %2046 = vmatpush3.bf16.msra.mxu1 %v2045_v59  ;;  %2022 = vmatprep.subr.bf16.mxu0 %v2021_v61  ;;  %v1008_v51 = vld [vmem:[%s3341_s6 + $0x40] sm:$0xff] (!%p1717_p3)  ;;  %v2066_v53 = vpack.c.bf16 (!%p1717_p3), %v1025_v50, %v1024_v49  ;;  %v1011_v58 = vld [vmem:[%s3341_s6 + $0x58] sm:$0xff] (!%p1717_p3)  ;;  %v2069_v59 = vpack.c.bf16 (!%p1717_p3), %v1027_v56, %v1026_v55  ;;  %v1013_v0 = vld [vmem:[%s3341_s6 + $0x68] sm:$0xff] (!%p1717_p3) }
 0x124   : > { %2047 = vmatprep.subr.bf16.mxu1 %v2596_v6  ;;  %v2090_v54 = vpack.c.bf16 (!%p1717_p3), %v1009_v52, %v1008_v51  ;;  %v2093_v60 = vpack.c.bf16 (!%p1717_p3), %v1011_v58, %v1010_v57  ;;  %v1028_v61 = vld [vmem:[#allocation13 + $0x60] sm:$0xff] (!%p1717_p3)  ;;  %v1029_v62 = vld [vmem:[#allocation13 + $0x68] sm:$0xff] (!%p1717_p3)  ;;  %v1719_v10 = vld [vmem:[#allocation12] ss:$0 sm:$0xff] (!%p1717_p3) }
 0x125   : > { %v1012_v63 = vld [vmem:[%s3341_s6 + $0x60] sm:$0xff] (!%p1717_p3)  ;;  %v2072_v1 = vpack.c.bf16 (!%p1717_p3), %v1029_v62, %v1028_v61  ;;  %v1224_v25 = vld [vmem:[%s3346_s11 + $0x38] sm:$0xff] (!%p1717_p3)  ;;  %v1226_v29 = vld [vmem:[%s3346_s11 + $0x48] sm:$0xff] (!%p1717_p3) }
 0x126   : > { %2024 = vmatpush3.bf16.msra.mxu0 %v2023_v3  ;;  %v2096_v2 = vpack.c.bf16 (!%p1717_p3), %v1013_v0, %v1012_v63  ;;  %v1030_v3 = vld [vmem:[#allocation13 + $0x70] sm:$0xff] (!%p1717_p3)  ;;  %v1228_v32 = vld [vmem:[%s3346_s11 + $0x58] sm:$0xff] (!%p1717_p3)  ;;  %v1231_v37 = vld [vmem:[%s3346_s11 + $0x70] sm:$0xff] (!%p1717_p3) }
 0x127   : > { %2049 = vmatpush3.bf16.msra.mxu1 %v2048_v4  ;;  %2026 = vmatprep.subr.bf16.mxu0 %v2025_v7  ;;  %v1031_v4 = vld [vmem:[#allocation13 + $0x78] sm:$0xff] (!%p1717_p3)  ;;  %v1015_v7 = vld [vmem:[%s3341_s6 + $0x78] sm:$0xff] (!%p1717_p3)  ;;  %v1225_v28 = vld [vmem:[%s3346_s11 + $0x40] sm:$0xff] (!%p1717_p3) }
 0x128   : > { %2050 = vmatprep.subr.bf16.mxu1 %v2596_v6  ;;  %v1016_v6 = vld [vmem:[#allocation13] sm:$0xff] (!%p1717_p3)  ;;  %v2075_v8 = vpack.c.bf16 (!%p1717_p3), %v1031_v4, %v1030_v3  ;;  %v2114_v30 = vpack.c.bf16 (!%p1717_p3), %v1226_v29, %v1225_v28  ;;  %v1722_v3 = vld [vmem:[%s3345_s10] ss:$0 sm:$0xff] (!%p1717_p3) }
 0x129   : > { %v2054_v27 = vpack.c.bf16 (!%p1717_p3), %v1017_v24, %v1016_v6  ;;  %v1223_v24 = vld [vmem:[%s3346_s11 + $0x30] sm:$0xff] (!%p1717_p3)  ;;  %v1232_v38 = vld [vmem:[%s3346_s11 + $0x78] sm:$0xff] (!%p1717_p3) }
 0x12a   : > { %2028 = vmatpush3.bf16.msra.mxu0 %v2027_v11  ;;  %v2099_v11 = vpack.c.bf16 (!%p1717_p3), %v1015_v7, %v1014_v5  ;;  %v2123_v39 = vpack.c.bf16 (!%p1717_p3), %v1232_v38, %v1231_v37  ;;  %v1724_v37 = vld [vmem:[%s3414_s14] ss:$0 sm:$0xff] (!%p1717_p3)  ;;  %s3420_s14 = sld [smem:[#allocation27_spill]] (!%p1717_p3) }
 0x12b   : > { %2052 = vmatpush3.bf16.msra.mxu1 %v2051_v12  ;;  %2053 = vmatprep.subr.bf16.mxu0 (!%p1717_p3), %v2599_v26 }
 0x12c   : > { %2077 = vmatprep.subr.bf16.mxu1 (!%p1717_p3), %v2599_v26 }
 0x12d   : > { %882 = vmatmul.mubr.f32.vlgmr.msra.gmra.mrb[0].mxu0 %v777_v13  ;;  %v1718_v13 = vld [vmem:[#allocation9] ss:$0 sm:$0xff] (!%p1717_p3) }
 0x12e   : > { %1879 = vmatmul.mubr.f32.vlgmr.msra.gmra.mrb[0].mxu1 %v783_v14  ;;  %1913 = vmatprep.mubr.msk.f32.mxu0 (!%p1717_p3), %vm2600_vm1, %v2601_v34 }
 0x12f   : > { %1948 = vmatprep.mubr.msk.f32.mxu1 (!%p1717_p3), %vm2600_vm1, %v2601_v34  ;;  %2055 = vmatpush3.bf16.msra.mxu0 (!%p1717_p3), %v2054_v27  ;;  %v2111_v27 = vpack.c.bf16 (!%p1717_p3), %v1224_v25, %v1223_v24 }
 0x130   : > { %2079 = vmatpush3.bf16.msra.mxu1 (!%p1717_p3), %v2078_v31  ;;  %2056 = vmatprep.subr.bf16.mxu0 (!%p1717_p3), %v2599_v26  ;;  %v1227_v31 = vld [vmem:[%s3346_s11 + $0x50] sm:$0xff] (!%p1717_p3) }
 0x131   : > { %2080 = vmatprep.subr.bf16.mxu1 (!%p1717_p3), %v2599_v26  ;;  %v2117_v33 = vpack.c.bf16 (!%p1717_p3), %v1228_v32, %v1227_v31 }
 0x133   : > { %2058 = vmatpush3.bf16.msra.mxu0 (!%p1717_p3), %v2057_v35  ;;  %v1230_v35 = vld [vmem:[%s3346_s11 + $0x68] sm:$0xff] (!%p1717_p3) }
 0x134   : > { %2082 = vmatpush3.bf16.msra.mxu1 (!%p1717_p3), %v2081_v36  ;;  %2059 = vmatprep.subr.bf16.mxu0 (!%p1717_p3), %v2599_v26 }
 0x135   : > { %2083 = vmatprep.subr.bf16.mxu1 (!%p1717_p3), %v2599_v26 }
 0x137   : > { %2061 = vmatpush3.bf16.msra.mxu0 (!%p1717_p3), %v2060_v41 }
 0x138   : > { %2085 = vmatpush3.bf16.msra.mxu1 (!%p1717_p3), %v2084_v42  ;;  %2062 = vmatprep.subr.bf16.mxu0 (!%p1717_p3), %v2599_v26  ;;  %v1720_v42 = vld [vmem:[#allocation15] ss:$0 sm:$0xff] (!%p1717_p3) }
 0x139   : > { %2086 = vmatprep.subr.bf16.mxu1 (!%p1717_p3), %v2599_v26 }
 0x13b   : > { %2064 = vmatpush3.bf16.msra.mxu0 (!%p1717_p3), %v2063_v47 }
 0x13c   : > { %2088 = vmatpush3.bf16.msra.mxu1 (!%p1717_p3), %v2087_v48  ;;  %2065 = vmatprep.subr.bf16.mxu0 (!%p1717_p3), %v2599_v26 }
 0x13d   : > { %2089 = vmatprep.subr.bf16.mxu1 (!%p1717_p3), %v2599_v26 }
 0x13f   : > { %2067 = vmatpush3.bf16.msra.mxu0 (!%p1717_p3), %v2066_v53 }
 0x140   : > { %2091 = vmatpush3.bf16.msra.mxu1 (!%p1717_p3), %v2090_v54  ;;  %2068 = vmatprep.subr.bf16.mxu0 (!%p1717_p3), %v2599_v26 }
 0x141   : > { %2092 = vmatprep.subr.bf16.mxu1 (!%p1717_p3), %v2599_v26 }
 0x143   : > { %2070 = vmatpush3.bf16.msra.mxu0 (!%p1717_p3), %v2069_v59 }
 0x144   : > { %2094 = vmatpush3.bf16.msra.mxu1 (!%p1717_p3), %v2093_v60  ;;  %2071 = vmatprep.subr.bf16.mxu0 (!%p1717_p3), %v2599_v26 }
 0x145   : > { %2095 = vmatprep.subr.bf16.mxu1 (!%p1717_p3), %v2599_v26 }
 0x147   : > { %2073 = vmatpush3.bf16.msra.mxu0 (!%p1717_p3), %v2072_v1  ;;  %v1721_v1 = vld [vmem:[%s3344_s9] ss:$0 sm:$0xff] (!%p1717_p3) }
 0x148   : > { %2097 = vmatpush3.bf16.msra.mxu1 (!%p1717_p3), %v2096_v2  ;;  %2074 = vmatprep.subr.bf16.mxu0 (!%p1717_p3), %v2599_v26 }
 0x149   : > { %2098 = vmatprep.subr.bf16.mxu1 (!%p1717_p3), %v2599_v26 }
 0x14b   : > { %2076 = vmatpush3.bf16.msra.mxu0 (!%p1717_p3), %v2075_v8  ;;  %v1349_v8 = vld [vmem:[%s3412_s22] sm:$0xff] (!%p1717_p3) }
 0x14c   : > { %2100 = vmatpush3.bf16.msra.mxu1 (!%p1717_p3), %v2099_v11  ;;  %2101 = vmatprep.subr.bf16.mxu0 (!%p1717_p3), %v2599_v26 }
 0x14d   : > { %2125 = vmatprep.subr.bf16.mxu1 (!%p1717_p3), %v2599_v26 }
 0x200   : > { %v1770_v16 = vpop.f32.mrb[0].mxu0  ;;  %981 = sbr.rel (%p1717_p3) target bundleno = 1813 (0x715), region = 132 }
 0x201   : > { %v972_v17 = vpop.f32.mrb[0].mxu1  ;;  %v1771_v19 = vpop.f32.mrb[1].mxu0 }
 0x202   : > { %v976_v20 = vadd.f32 %v972_v17, %v889_v15  ;;  %v1880_v21 = vpop.f32.mrb[1].mxu1  ;;  %v1772_v22 = vadd.f32 %v1771_v19, %v1770_v16  ;;  %v1217_v16 = vld [vmem:[%s3346_s11] sm:$0xff] (!%p1717_p3)  ;;  %v1218_v17 = vld [vmem:[%s3346_s11 + $0x8] sm:$0xff] (!%p1717_p3)  ;;  %v1219_v19 = vld [vmem:[%s3346_s11 + $0x10] sm:$0xff] (!%p1717_p3) }
 0x204   : > { %977 = vst [vmem:[#allocation3] sm:$0xff] %v976_v20  ;;  %v887_v23 = vadd.f32 %v1772_v22, %v784_v18  ;;  %v2102_v18 = vpack.c.bf16 (!%p1717_p3), %v1218_v17, %v1217_v16  ;;  %v1220_v20 = vld [vmem:[%s3346_s11 + $0x18] sm:$0xff] (!%p1717_p3)  ;;  %v1221_v22 = vld [vmem:[%s3346_s11 + $0x20] sm:$0xff] (!%p1717_p3) }
 0x205   : > { %v2105_v21 = vpack.c.bf16 (!%p1717_p3), %v1220_v20, %v1219_v19 }
 0x206   : > { %888 = vst [vmem:[#allocation2] sm:$0xff] %v887_v23  ;;  %v1222_v23 = vld [vmem:[%s3346_s11 + $0x28] sm:$0xff] (!%p1717_p3) }
 0x207   : > { %v2108_v6 = vpack.c.bf16 %v1222_v23, %v1221_v22 }
 0x20b   : > { %v991_v9 = vld [vmem:[#allocation3] sm:$0xff] }
 0x20c   : > { %v999_v14 = vadd.f32 %v1719_v10, %v991_v9  ;;  %v1350_v9 = vld [vmem:[%s3412_s22 + $0x8] sm:$0xff]  ;;  %v1351_v10 = vld [vmem:[%s3412_s22 + $0x10] sm:$0xff] }
 0x20d   : > { %v982_v12 = vld [vmem:[#allocation2] sm:$0xff]  ;;  %v2126_v11 = vpack.c.bf16 %v1350_v9, %v1349_v8 }
 0x20e   : > { %v990_v15 = vadd.f32 %v1718_v13, %v982_v12  ;;  %1914 = vmatmul.mubr.f32.vlgmr.msra.gmra.mrb[0].mxu0 %v999_v14  ;;  %v1352_v12 = vld [vmem:[%s3412_s22 + $0x18] sm:$0xff]  ;;  %v1723_v14 = vld [vmem:[%s3413_s20] ss:$0 sm:$0xff]  ;;  %s3419_s20 = sld [smem:[#allocation43_spill]] }
 0x20f   : > { %1983 = vmatprep.mubr.msk.f32.mxu0 %vm2600_vm1, %v2601_v34  ;;  %2103 = vmatpush3.bf16.msra.mxu0 %v2102_v18  ;;  %v2129_v13 = vpack.c.bf16 %v1352_v12, %v1351_v10 }
 0x210   : > { %1949 = vmatmul.mubr.f32.vlgmr.msra.gmra.mrb[0].mxu1 %v990_v15  ;;  %2104 = vmatprep.subr.bf16.mxu0 %v2599_v26 }
 0x211   : > { %1994 = vmatprep.mubr.msk.f32.mxu1 %vm2600_vm1, %v2601_v34  ;;  %v1229_v34 = vld [vmem:[%s3346_s11 + $0x60] sm:$0xff]  ;;  %2127 = vmatpush3.bf16.msra.mxu1 %v2126_v11 }
 0x212   : > { %v2120_v36 = vpack.c.bf16 %v1230_v35, %v1229_v34  ;;  %2128 = vmatprep.subr.bf16.mxu1 %v2599_v26 }
 0x213   : > { %2106 = vmatpush3.bf16.msra.mxu0 %v2105_v21 }
 0x214   : > { %2107 = vmatprep.subr.bf16.mxu0 %v2599_v26 }
 0x215   : > { %2130 = vmatpush3.bf16.msra.mxu1 %v2129_v13 }
 0x217   : > { %2109 = vmatpush3.bf16.msra.mxu0 %v2108_v6 }
 0x218   : > { %2110 = vmatprep.subr.bf16.mxu0 %v2599_v26 }
 0x21b   : > { %2112 = vmatpush3.bf16.msra.mxu0 %v2111_v27 }
 0x21c   : > { %2113 = vmatprep.subr.bf16.mxu0 %v2599_v26 }
 0x21f   : > { %2115 = vmatpush3.bf16.msra.mxu0 %v2114_v30 }
 0x220   : > { %2116 = vmatprep.subr.bf16.mxu0 %v2599_v26 }
 0x223   : > { %2118 = vmatpush3.bf16.msra.mxu0 %v2117_v33 }
 0x224   : > { %2119 = vmatprep.subr.bf16.mxu0 %v2599_v26 }
 0x227   : > { %2121 = vmatpush3.bf16.msra.mxu0 %v2120_v36 }
 0x228   : > { %2122 = vmatprep.subr.bf16.mxu0 %v2599_v26 }
 0x22b   : > { %2124 = vmatpush3.bf16.msra.mxu0 %v2123_v39  ;;  %v1725_v39 = vld [vmem:[%s3415_s5] ss:$0 sm:$0xff] }
 0x2e1   : > { %v1098_v40 = vpop.f32.mrb[0].mxu0 }
 0x2e2   : > { %v1915_v43 = vpop.f32.mrb[1].mxu0 }
 0x2e3   : > { %v1168_v41 = vpop.f32.mrb[0].mxu1  ;;  %v1726_v43 = vld [vmem:[%s3416_s13] ss:$0 sm:$0xff] }
 0x2e4   : > { %v1169_v44 = vadd.f32 %v1168_v41, %v1098_v40  ;;  %v1950_v45 = vpop.f32.mrb[1].mxu1 }
 0x2e6   : > { %v1179_v46 = vadd.f32 %v1720_v42, %v1169_v44 }
 0x2e8   : > { %v1182_v47 = vrot.slane %v1179_v46, 4 }
 0x2ea   : > { %v1183_v48 = vadd.f32 %v1182_v47, %v1179_v46 }
 0x2ec   : > { %v1184_v49 = vrot.slane %v1183_v48, 2 }
 0x2ee   : > { %v1185_v50 = vadd.f32 %v1184_v49, %v1183_v48 }
 0x2f0   : > { %v1186_v51 = vrot.slane %v1185_v50, 1 }
 0x2f2   : > { %v1187_v52 = vadd.f32 %v1186_v51, %v1185_v50 }
 0x2f4   : > { %v1189_v53 = vmul.f32 0.125, %v1187_v52 }
 0x2f6   : > { %v1190_v54 = vsub.f32 %v1179_v46, %v1189_v53 }
 0x2f8   : > { %v1191_v55 = vmul.f32 %v1190_v54, %v1190_v54 }
 0x2fa   : > { %v1192_v56 = vrot.slane %v1191_v55, 4 }
 0x2fc   : > { %v1193_v57 = vadd.f32 %v1192_v56, %v1191_v55 }
 0x2fe   : > { %v1194_v58 = vrot.slane %v1193_v57, 2 }
 0x300   : > { %v1195_v59 = vadd.f32 %v1194_v58, %v1193_v57 }
 0x302   : > { %v1196_v60 = vrot.slane %v1195_v59, 1 }
 0x304   : > { %v1197_v61 = vadd.f32 %v1196_v60, %v1195_v59 }
 0x306   : > { %v1198_v62 = vmul.f32 0.125, %v1197_v61 }
 0x308   : > { %v1199_v63 = vadd.f32 1e-05, %v1198_v62 }
 0x30a   : > { %2254 = vrsqrt.f32 %v1199_v63 }
 0x314   : > { %v2255_v0 = vpop.eup %2254 }
 0x315   : > { %v1201_v2 = vmul.f32 %v2255_v0, %v1190_v54 }
 0x317   : > { %v1208_v4 = vmul.f32 %v1721_v1, %v1201_v2 }
 0x319   : > { %v1215_v5 = vadd.f32 %v1722_v3, %v1208_v4  ;;  %v1728_v3 = vld [vmem:[%s3417_s12] ss:$0 sm:$0xff] }
 0x31b   : > { %2256 = vtanh.f32 %v1215_v5  ;;  %v1729_v5 = vld [vmem:[%s3418_s7] ss:$0 sm:$0xff] }
 0x325   : > { %v2257_v7 = vpop.eup %2256 }
 0x326   : > { %1984 = vmatmul.mubr.f32.vlgmr.msra.gmra.mrb[2].mxu0 %v2257_v7 }
 0x3f9   : > { %v1306_v15 = vpop.f32.mrb[2].mxu0 }
 0x3fa   : > { %v1307_v16 = vadd.f32 %v1723_v14, %v1306_v15  ;;  %v1985_v17 = vpop.f32.mrb[3].mxu0 }
 0x3fb   : > { %v2603_v17 = vmov 1  }
 0x3fc   : > { %v1313_v18 = vsel %vm1312_vm2, %v1307_v16, 0.0  ;;  %2253 = vset.pattern.permute.xlu0 %v2603_v17 }
 0x3fd   : > { %v1314_v19 = vrot.slane %v1313_v18, 4 }
 0x3ff   : > { %v1315_v20 = vadd.f32 %v1314_v19, %v1313_v18 }
 0x401   : > { %v1316_v21 = vrot.slane %v1315_v20, 2 }
 0x403   : > { %v1317_v22 = vadd.f32 %v1316_v21, %v1315_v20  ;;  %v1484_v21 = vld [vmem:[%s3420_s14] sm:$0xff] }
 0x405   : > { %v1318_v23 = vrot.slane %v1317_v22, 1 }
 0x407   : > { %v1319_v6 = vadd.f32 %v1318_v23, %v1317_v22  ;;  %v1485_v22 = vld [vmem:[%s3420_s14 + $0x8] sm:$0xff]  ;;  %v1486_v23 = vld [vmem:[%s3420_s14 + $0x10] sm:$0xff] }
 0x409   : > { %v1320_v24 = vmul.f32 0.125, %v1319_v6  ;;  %v1487_v6 = vld [vmem:[%s3420_s14 + $0x18] sm:$0xff] }
 0x40b   : > { %v1321_v25 = vsub.f32 %v1307_v16, %v1320_v24  ;;  %v2602_v16 = vmov 0   ;;  %v1488_v24 = vld [vmem:[%s3420_s14 + $0x20] sm:$0xff] }
 0x40c   : > { %2251 = vset.pattern.permute.xlu1 %v2602_v16 }
 0x40d   : > { %v1322_v26 = vmul.f32 %v1321_v25, %v1321_v25 }
 0x40f   : > { %v1323_v27 = vsel %vm1312_vm2, %v1322_v26, 0.0  ;;  %v1490_v26 = vld [vmem:[%s3420_s14 + $0x30] sm:$0xff] }
 0x410   : > { %v1324_v28 = vrot.slane %v1323_v27, 4 }
 0x412   : > { %v1325_v29 = vadd.f32 %v1324_v28, %v1323_v27  ;;  %v1491_v27 = vld [vmem:[%s3420_s14 + $0x38] sm:$0xff] }
 0x414   : > { %v1326_v30 = vrot.slane %v1325_v29, 2 }
 0x416   : > { %v1327_v31 = vadd.f32 %v1326_v30, %v1325_v29 }
 0x418   : > { %v1328_v32 = vrot.slane %v1327_v31, 1 }
 0x41a   : > { %v1329_v33 = vadd.f32 %v1328_v32, %v1327_v31 }
 0x41c   : > { %v1330_v34 = vmul.f32 0.125, %v1329_v33 }
 0x41e   : > { %v1331_v35 = vadd.f32 1e-05, %v1330_v34 }
 0x420   : > { %2258 = vrsqrt.f32 %v1331_v35 }
 0x42a   : > { %v2259_v36 = vpop.eup %2258 }
 0x42b   : > { %v1333_v38 = vmul.f32 %v2259_v36, %v1321_v25  ;;  %v1489_v25 = vld [vmem:[%s3420_s14 + $0x28] sm:$0xff] }
 0x42d   : > { %v1340_v40 = vmul.f32 %v1724_v37, %v1333_v38  ;;  %v1513_v37 = vld [vmem:[#allocation4] sm:$0xff]  ;;  %v1514_v38 = vld [vmem:[#allocation4 + $0x8] sm:$0xff] }
 0x42f   : > { %v1347_v41 = vadd.f32 %v1725_v39, %v1340_v40  ;;  %v1515_v39 = vld [vmem:[#allocation4 + $0x10] sm:$0xff]  ;;  %v1516_v40 = vld [vmem:[#allocation4 + $0x18] sm:$0xff] }
 0x431   : > { %2260 = vtanh.f32 %v1347_v41 }
 0x43b   : > { %v2261_v42 = vpop.eup %2260 }
 0x43c   : > { %1995 = vmatmul.mubr.msk.f32.vlgmr.msra.gmra.mrb[2].mxu1 %vm1312_vm2, %v2261_v42 }
 0x50f   : > { %v1429_v44 = vpop.f32.mrb[2].mxu1 }
 0x510   : > { %v1430_v45 = vadd.f32 %v1726_v43, %v1429_v44  ;;  %v1996_v46 = vpop.f32.mrb[3].mxu1 }
 0x512   : > { %v1436_v47 = vsel %vm1435_vm3, %v1430_v45, 0.0 }
 0x513   : > { %v1437_v48 = vrot.slane %v1436_v47, 4 }
 0x515   : > { %v1438_v49 = vadd.f32 %v1437_v48, %v1436_v47 }
 0x517   : > { %v1439_v50 = vrot.slane %v1438_v49, 2 }
 0x519   : > { %v1440_v51 = vadd.f32 %v1439_v50, %v1438_v49 }
 0x51b   : > { %v1441_v52 = vrot.slane %v1440_v51, 1 }
 0x51d   : > { %v1442_v53 = vadd.f32 %v1441_v52, %v1440_v51 }
 0x51f   : > { %v1443_v54 = vmul.f32 0.125, %v1442_v53 }
 0x521   : > { %v1444_v55 = vsub.f32 %v1430_v45, %v1443_v54 }
 0x523   : > { %v1445_v56 = vmul.f32 %v1444_v55, %v1444_v55 }
 0x525   : > { %v1446_v57 = vsel %vm1435_vm3, %v1445_v56, 0.0 }
 0x526   : > { %v1447_v58 = vrot.slane %v1446_v57, 4 }
 0x528   : > { %v1448_v59 = vadd.f32 %v1447_v58, %v1446_v57 }
 0x52a   : > { %v1449_v60 = vrot.slane %v1448_v59, 2 }
 0x52c   : > { %v1450_v61 = vadd.f32 %v1449_v60, %v1448_v59 }
 0x52e   : > { %v1451_v62 = vrot.slane %v1450_v61, 1 }
 0x530   : > { %v1452_v63 = vadd.f32 %v1451_v62, %v1450_v61 }
 0x532   : > { %v1453_v0 = vmul.f32 0.125, %v1452_v63 }
 0x534   : > { %v1454_v1 = vadd.f32 1e-05, %v1453_v0 }
 0x536   : > { %2262 = vrsqrt.f32 %v1454_v1 }
 0x540   : > { %v2263_v2 = vpop.eup %2262 }
 0x541   : > { %v1456_v4 = vmul.f32 %v2263_v2, %v1444_v55 }
 0x543   : > { %v1463_v7 = vmul.f32 %v1728_v3, %v1456_v4 }
 0x545   : > { %v1470_v8 = vadd.f32 %v1729_v5, %v1463_v7 }
 0x547   : > { %2264 = vtanh.f32 %v1470_v8 }
 0x551   : > { %v2265_v9 = vpop.eup %2264 }
 0x552   : > { %v1472_v10 = vsel %vm1435_vm3, %v2265_v9, -inf }
 0x553   : > { %1473 = vmax.xlane.f32.xlu0 %v1472_v10 }
 0x5e0   : > { %v1474_v11 = vpop.xlane.xlu0 %1473 }
 0x5e1   : > { %v1475_v12 = vsub.f32 %v2265_v9, %v1474_v11 }
 0x5e3   : > { %v1476_v13 = vmul.f32 1.442695, %v1475_v12 }
 0x5e5   : > { %2266 = vpow2.f32 %v1476_v13 }
 0x5ef   : > { %v2267_v14 = vpop.eup %2266 }
 0x5f0   : > { %v1478_v15 = vsel %vm1435_vm3, %v2267_v14, 0.0 }
 0x5f1   : > { %1479 = vadd.xlane.f32.xlu0 %v1478_v15 }
 0x67e   : > { %v1480_v18 = vpop.xlane.xlu0 %1479 }
 0x67f   : > { %2268 = vrcp.f32 %v1480_v18 }
 0x689   : > { %v2269_v19 = vpop.eup %2268 }
 0x68a   : > { %v1482_v20 = vmul.f32 %v2269_v19, %v2267_v14 }
 0x68c   : > { %1494 = vperm.xlu1 %2251, %v1482_v20   ;;  %1483 = vst.msk [vmem:[%s3419_s20] sm:$0xff] %vm1435_vm3, %v1482_v20 }
 0x690   : > { %2252 = vset.pattern.permute.xlu1 %v2603_v17 }
 0x691   : > { %1518 = vperm.xlu1 %2252, %v1482_v20  }
 0x70b   : > { %v1495_v28 = vpop.permute.xlu1 %1494 }
 0x70c   : > { %v1497_v29 = vmul.f32 %v1495_v28, %v1484_v21  ;;  %v1498_v30 = vmul.f32 %v1495_v28, %v1485_v22  ;;  %v1499_v31 = vmul.f32 %v1495_v28, %v1486_v23  ;;  %v1500_v32 = vmul.f32 %v1495_v28, %v1487_v6 }
 0x70d   : > { %v1501_v33 = vmul.f32 %v1495_v28, %v1488_v24  ;;  %v1502_v34 = vmul.f32 %v1495_v28, %v1489_v25  ;;  %v1503_v35 = vmul.f32 %v1495_v28, %v1490_v26  ;;  %v1504_v36 = vmul.f32 %v1495_v28, %v1491_v27 }
 0x70e   : > { %1505 = vst [vmem:[#allocation16] sm:$0xff] %v1497_v29  ;;  %1506 = vst [vmem:[#allocation16 + $0x8] sm:$0xff] %v1498_v30 }
 0x70f   : > { %1507 = vst [vmem:[#allocation16 + $0x10] sm:$0xff] %v1499_v31  ;;  %1508 = vst [vmem:[#allocation16 + $0x18] sm:$0xff] %v1500_v32 }
 0x710   : > { %1509 = vst [vmem:[#allocation16 + $0x20] sm:$0xff] %v1501_v33  ;;  %1510 = vst [vmem:[#allocation16 + $0x28] sm:$0xff] %v1502_v34  ;;  %v1519_v41 = vpop.permute.xlu1 %1518 }
 0x711   : > { %1511 = vst [vmem:[#allocation16 + $0x30] sm:$0xff] %v1503_v35  ;;  %1512 = vst [vmem:[#allocation16 + $0x38] sm:$0xff] %v1504_v36  ;;  %v1521_v42 = vmul.f32 %v1519_v41, %v1513_v37  ;;  %v1522_v43 = vmul.f32 %v1519_v41, %v1514_v38  ;;  %v1523_v44 = vmul.f32 %v1519_v41, %v1515_v39 }
 0x712   : > { %v1524_v45 = vmul.f32 %v1519_v41, %v1516_v40 }
 0x713   : > { %1525 = vst [vmem:[#allocation17] sm:$0xff] %v1521_v42  ;;  %1526 = vst [vmem:[#allocation17 + $0x8] sm:$0xff] %v1522_v43 }
 0x714   : > { %1527 = vst [vmem:[#allocation17 + $0x10] sm:$0xff] %v1523_v44  ;;  %1528 = vst [vmem:[#allocation17 + $0x18] sm:$0xff] %v1524_v45 }
 0x715 PF: > { %p2197_p10 = scmp.eq.s32.totalorder %s2735_s3, 3  ;;  %s2604_s20 = smov [#allocation16]  }
 0x716   : > { %s1536_s18 = sshll.u32 %s2604_s20, 4  ;;  %s2605_s29 = smov [#allocation17]   ;;  %s1537_s18 = int_to_ptr.vmem [resolvable:$true] %s1536_s18 }
 0x717   : > { %s1547_s14 = sshll.u32 %s2605_s29, 4  ;;  %s2470_s16 = scalar_lea.vmem %s1537_s18, 1024  ;;  %s1548_s14 = int_to_ptr.vmem [resolvable:$true] %s1547_s14 }
 0x718   : > { %p2471_p9 = scmp.ne.s32.totalorder %s1537_s18, %s2470_s16  ;;  %p2477_p11 = scmp.lt.s32.totalorder %s1537_s18, %s1537_s18 }
 0x719   : > { %p2478_p1 = scmp.lt.s32.totalorder %s2470_s16, %s2470_s16 }
 0x71a   : > { %p2472_p6 = pnand %p2471_p9, %p2197_p10 }
 0x71b   : > { %p2479_p8 = por %p2478_p1, %p2477_p11 }
 0x71c   : > { %p2473_p7 = pneg %p2472_p6 }
 0x71e   : > { %p2480_p4 = pnand %p2479_p8, %p2473_p7 }
 0x720   : > { %2483 = shalt.err (!%p2480_p4)
}
 0x721   : > { %s3421_s0 = sld [smem:[#allocation41_spill]] }
 0x727   : > { %s2484_s2 = scalar_lea.hbm %s3421_s0, 1024 }
 0x728   : > { %p2485_p5 = scmp.ne.s32.totalorder %s3421_s0, %s2484_s2  ;;  %p2490_p2 = scmp.lt.u32.totalorder %s2484_s2, %s3421_s0 }
 0x72a   : > { %p2486_p12 = pnand %p2485_p5, %p2197_p10 }
 0x72c   : > { %p2487_p0 = pneg %p2486_p12 }
 0x72e   : > { %p2492_p13 = pnand %p2490_p2, %p2487_p0 }
 0x730   : > { %2495 = shalt.err (!%p2492_p13)
}
 0x731   : > { %2156 = dma.vmem_to_hbm [thread:$0]  (%p2197_p10), %s1537_s18, 1024, %s3421_s0, [#allocation6]  }
 0x732   : > { %s2496_s7 = scalar_lea.vmem %s1548_s14, 512  ;;  %p2503_p7 = scmp.lt.s32.totalorder %s1548_s14, %s1548_s14 }
 0x733   : > { %p2497_p3 = scmp.ne.s32.totalorder %s1548_s14, %s2496_s7  ;;  %p2504_p11 = scmp.lt.s32.totalorder %s2496_s7, %s2496_s7 }
 0x735   : > { %p2498_p9 = pnand %p2497_p3, %p2197_p10  ;;  %p2505_p1 = por %p2504_p11, %p2503_p7 }
 0x737   : > { %p2499_p6 = pneg %p2498_p9 }
 0x739   : > { %p2506_p8 = pnand %p2505_p1, %p2499_p6 }
 0x73b   : > { %2509 = shalt.err (!%p2506_p8)
}
 0x73c   : > { %s3422_s20 = sld [smem:[#allocation42_spill]] }
 0x742   : > { %s2510_s29 = scalar_lea.hbm %s3422_s20, 512 }
 0x743   : > { %p2511_p4 = scmp.ne.s32.totalorder %s3422_s20, %s2510_s29  ;;  %p2516_p0 = scmp.lt.u32.totalorder %s2510_s29, %s3422_s20 }
 0x745   : > { %p2512_p5 = pnand %p2511_p4, %p2197_p10 }
 0x747   : > { %p2513_p12 = pneg %p2512_p5 }
 0x749   : > { %p2518_p2 = pnand %p2516_p0, %p2513_p12 }
 0x74b   : > { %2521 = shalt.err (!%p2518_p2)
}
 0x74c   : > { %2158 = dma.vmem_to_hbm [thread:$0]  (%p2197_p10), %s1548_s14, 512, %s3422_s20, [#allocation18]  }
 0x74d   : > { %2563 = dma.done.wait (%p2197_p10), [#allocation6], 1024  }
 0x74e   : > { %2565 = vsyncadd (%p2197_p10), [#allocation6], 4294966272 }
 0x74f   : > { %2567 = dma.done.wait (%p2197_p10), [#allocation18], 512  }
 0x750   : > { %2569 = vsyncadd (%p2197_p10), [#allocation18], 4294966784 }
 0x751 PF: > { %p39_p13 = scmp.ge.s32.totalorder %s2875_s30, 6   ;;  %s3423_s2 = smov %s2576_s25 }
 0x752   : > { %s3424_s25 = smov %s2580_s26  ;;  %s3425_s26 = smov %s2885_s23 }
 0x753   : > { %s3426_s27 = smov %s2875_s30  ;;  %41 = sbr.rel (!%p39_p13) target bundleno = 27 (0x1b), region = 193 }
 0x75a   :  { %1570 = vsyncpa [#allocation5], 1 }
 0x75b   :  { %1572 = vsyncpa [#allocation5 + $0x1], 1 }
 0x75c   :  { %1573 = vsyncpa [#allocation8], 1 }
 0x75d   :  { %1575 = vsyncpa [#allocation8 + $0x1], 1 }
 0x75e   :  { %1576 = vsyncpa [#allocation11], 1 }
 0x75f   :  { %1578 = vsyncpa [#allocation11 + $0x1], 1 }
 0x760   :  { %1579 = vsyncpa [#allocation14], 1 }
 0x761   :  { %1580 = vsyncpa [#allocation6], 1 }
 0x762   :  { %1582 = vsyncpa [#allocation6 + $0x1], 1 }
 0x763   :  { %1583 = vsyncpa [#allocation18], 1 }

</bundles_post_ra>
